<compile_context>
chip_gen: v5e
topology: v5e:2x2
jax: 0.10.0
libtpu: 0.0.40
codegen_flags: <defaults>
</compile_context>

<pallas_src>
from functools import partial

import jax
import jax.numpy as jnp
from jax.experimental import pallas as pl
from jax.experimental.pallas import tpu as pltpu


# ----------------------------------------------------------------------------
# Fused RDB kernel factory
# ----------------------------------------------------------------------------
def _make_rdb_kernel(*, C, G0, G, k, W, HW, PAD, mxu_dtype):
    khalf = k // 2
    Cmax = G0 + C * G

    def kernel(*refs):
        # refs = x, (w_c, b_c) * C, w_lff, b_lff, o, buf_scratch
        x_ref = refs[0]
        conv_w = [refs[1 + 2 * c] for c in range(C)]   # (k*k, G, cin_c) bf16
        conv_b = [refs[2 + 2 * c] for c in range(C)]   # (G, 1) f32
        lff_w = refs[1 + 2 * C]                        # (G0, Cmax) bf16
        lff_b = refs[2 + 2 * C]                        # (G0, 1) f32
        o_ref = refs[3 + 2 * C]                        # (1, G0, HW)
        buf_ref = refs[4 + 2 * C]                      # (Cmax, 2*PAD+HW) f32

        # Zero ONLY the lane-pad regions: they implement the vertical part of
        # "same" padding (out-of-image row reads land there).  The interior is
        # fully overwritten below every grid step, so it needs no zeroing.
        zpad = jnp.zeros((Cmax, PAD), jnp.float32)
        buf_ref[:, 0:PAD] = zpad
        buf_ref[:, PAD + HW:PAD + HW + PAD] = zpad

        # Channels [0:G0] of the concat buffer <- the block input.
        buf_ref[0:G0, PAD:PAD + HW] = x_ref[0].astype(jnp.float32)

        # Column (horizontal wrap-around) masks.  Applied to the small (G, HW)
        # per-dx partial sums; since the mask is 0/1 and depends only on the
        # output column, this is exactly equivalent to masking the (cin, HW)
        # input windows (as v1 did) but far cheaper on the VPU.
        x_idx = jax.lax.broadcasted_iota(jnp.int32, (1, HW), 1) % W
        col_mask = {}
        for dx in range(-khalf, khalf + 1):
            if dx == 0:
                continue
            m = jnp.logical_and(x_idx + dx >= 0, x_idx + dx <= W - 1)
            col_mask[dx] = m.astype(jnp.float32)

        # C dense conv layers: k*k accumulated per-tap MXU matmuls (no im2col
        # staging, no taps scratch).
        for c in range(C):
            cin = G0 + c * G
            part = {}
            for dx in range(-khalf, khalf + 1):
                a = None
                for ky in range(k):
                    dy = ky - khalf
                    delta = dy * W + dx
                    t = ky * k + (dx + khalf)
                    win = buf_ref[0:cin,
                                  PAD + delta:PAD + delta + HW].astype(mxu_dtype)
                    d = jnp.dot(conv_w[c][t], win,             # (G, cin)x(cin, HW)
                                preferred_element_type=jnp.float32)
                    a = d if a is None else a + d
                part[dx] = a                                    # (G, HW) f32
            acc = part[0] + conv_b[c][...]
            for dx in range(-khalf, khalf + 1):
                if dx == 0:
                    continue
                acc = acc + col_mask[dx] * part[dx]
            acc = jnp.maximum(acc, 0.0)                         # bias + ReLU
            # torch.cat((x, out), 1): append the G new channels.
            buf_ref[G0 + c * G:G0 + (c + 1) * G, PAD:PAD + HW] = acc

        # 1x1 local feature fusion over the full concat, then the residual.
        feats = buf_ref[:, PAD:PAD + HW].astype(mxu_dtype)      # (Cmax, HW)
        lff = jnp.dot(lff_w[...], feats,
                      preferred_element_type=jnp.float32)       # (G0, HW)
        lff = lff + lff_b[...]
        o_ref[0] = (lff + x_ref[0].astype(jnp.float32)).astype(o_ref.dtype)

    return kernel


# ----------------------------------------------------------------------------
# Wrapper: NCHW in / NCHW out (matches the PyTorch module)
# ----------------------------------------------------------------------------
def rdb_forward(x_nchw, prepared, *, G0, G, C, k=3, mxu_dtype=jnp.bfloat16):
    N, Cx, H, W = x_nchw.shape
    assert Cx == G0, (Cx, G0)
    HW = H * W
    PAD = 128                                   # lane padding of concat buffer
    assert (k // 2) * (W + 1) <= PAD            # shifted windows stay in pad
    Cmax = G0 + C * G

    x_flat = x_nchw.reshape(N, G0, HW)          # NCHW is already (C, H*W)-major

    kernel = _make_rdb_kernel(C=C, G0=G0, G=G, k=k, W=W, HW=HW, PAD=PAD,
                              mxu_dtype=mxu_dtype)

    def _full_spec(a):
        return pl.BlockSpec(a.shape, lambda n, _r=a.ndim: (0,) * _r)

    in_specs = [pl.BlockSpec((1, G0, HW), lambda n: (n, 0, 0))]
    in_specs += [_full_spec(a) for a in prepared]

    # Explicit VMEM budget: concat-buffer scratch + (double-buffered) params +
    # double-buffered x/out blocks, with ~50% headroom.  Defaults (16 MiB v5e,
    # 32 MiB v6e/v7x) are not relied upon.
    scratch_bytes = Cmax * (HW + 2 * PAD) * 4
    weight_bytes = int(sum(int(a.size) * a.dtype.itemsize for a in prepared))
    io_bytes = 2 * 2 * G0 * HW * x_nchw.dtype.itemsize
    vmem_est = scratch_bytes + 2 * weight_bytes + io_bytes
    # TODO(synk): spatial-tile over H (with khalf halo rows, 128-multiple row
    # stride) once vmem_est approaches ~32 MiB so v7x's 64 MiB/TC still fits.
    assert vmem_est < 40 * 1024 * 1024, (
        "spatial tile too large for a single-block RDB kernel; tile over H")
    vmem_limit = int(min(60 * 1024 * 1024,
                         max(16 * 1024 * 1024, int(vmem_est * 1.5))))

    out = pl.pallas_call(
        kernel,
        out_shape=jax.ShapeDtypeStruct((N, G0, HW), x_nchw.dtype),
        grid=(N,),
        in_specs=in_specs,
        out_specs=pl.BlockSpec((1, G0, HW), lambda n: (n, 0, 0)),
        scratch_shapes=[
            pltpu.VMEM((Cmax, HW + 2 * PAD), jnp.float32),   # concat buffer
        ],
        compiler_params=pltpu.CompilerParams(
            dimension_semantics=("parallel",),
            vmem_limit_bytes=vmem_limit),
    )(x_flat, *prepared)
    return out.reshape(N, G0, H, W)


# ----------------------------------------------------------------------------
# Parameters: PyTorch-layout init + one-time kernel re-layout
# ----------------------------------------------------------------------------
def init_rdb_params(key, G0, G, C, k=3):
    keys = jax.random.split(key, 2 * (C + 1))
    params = {"convs": [], "lff": None}
    ki = 0
    for c in range(C):
        cin = G0 + c * G
        fan_in = cin * k * k
        w = jax.random.normal(keys[ki], (G, cin, k, k),
                              jnp.float32) / jnp.sqrt(float(fan_in))
        b = 0.01 * jax.random.normal(keys[ki + 1], (G,), jnp.float32)
        params["convs"].append({"w": w, "b": b})
        ki += 2
    cin = G0 + C * G
    w = jax.random.normal(keys[ki], (G0, cin, 1, 1),
                          jnp.float32) / jnp.sqrt(float(cin))
    b = 0.01 * jax.random.normal(keys[ki + 1], (G0,), jnp.float32)
    params["lff"] = {"w": w, "b": b}
    return params


def prepare_rdb_params(params, mxu_dtype=jnp.bfloat16):
    """One-time re-layout: OIHW -> (k*k, Cout, Cin) tap slabs (MXU dtype),
    bias -> (Cout, 1) f32 columns; LFF 1x1 -> (G0, Cmax) rows."""
    flat = []
    for p in params["convs"]:
        w = p["w"]                                  # (G, cin, k, k)
        cout, cin, kh, kw = w.shape
        w2 = jnp.transpose(w, (2, 3, 0, 1)).reshape(kh * kw, cout, cin)
        flat.append(w2.astype(mxu_dtype))
        flat.append(p["b"].reshape(cout, 1).astype(jnp.float32))
    wl = params["lff"]["w"]
    flat.append(wl.reshape(wl.shape[0], wl.shape[1]).astype(mxu_dtype))
    flat.append(params["lff"]["b"].reshape(-1, 1).astype(jnp.float32))
    return flat


# ----------------------------------------------------------------------------
# Pure-JAX reference (correctness check only)
# ----------------------------------------------------------------------------
def rdb_reference(x, params):
    h = x
    for p in params["convs"]:
        o = jax.lax.conv_general_dilated(
            h, p["w"], (1, 1), "SAME",
            dimension_numbers=("NCHW", "OIHW", "NCHW"))
        o = jnp.maximum(o + p["b"].reshape(1, -1, 1, 1), 0.0)
        h = jnp.concatenate([h, o], axis=1)                 # RDBConv concat
    lff = jax.lax.conv_general_dilated(
        h, params["lff"]["w"], (1, 1), "SAME",
        dimension_numbers=("NCHW", "OIHW", "NCHW"))
    return lff + params["lff"]["b"].reshape(1, -1, 1, 1) + x  # residual


if __name__ == "__main__":
    # RDB(growRate0=8, growRate=8, nConvLayers=3), batch=2, 16x16 spatial.
    G0, G, C = 8, 8, 3
    N, H, W = 2, 16, 16

    key = jax.random.PRNGKey(0)
    pkey, xkey = jax.random.split(key)
    params = init_rdb_params(pkey, G0, G, C)
    x = jax.random.normal(xkey, (N, G0, H, W), jnp.float32)

    prepared = prepare_rdb_params(params, mxu_dtype=jnp.bfloat16)

    fwd = jax.jit(partial(rdb_forward, prepared=prepared, G0=G0, G=G, C=C))
    out = jax.block_until_ready(fwd(x))

    ref = jax.block_until_ready(jax.jit(lambda xx: rdb_reference(xx, params))(x))

    assert out.shape == (N, G0, H, W), out.shape
    max_err = float(jnp.max(jnp.abs(out - ref)))
    # bf16 MXU operands with f32 accumulation -> looser tolerance than pure f32.
    assert jnp.allclose(out, ref, rtol=5e-2, atol=5e-2), max_err
    print("KERNEL_OK")
</pallas_src>

<mosaic_0001>
module attributes {stable_mosaic.version = 11 : i64} {
  func.func @kernel(%arg0: i32, %arg1: memref<1x8x256xf32, #tpu.memory_space<vmem>>, %arg2: memref<9x8x8xbf16, #tpu.memory_space<vmem>>, %arg3: memref<8x1xf32, #tpu.memory_space<vmem>>, %arg4: memref<9x8x16xbf16, #tpu.memory_space<vmem>>, %arg5: memref<8x1xf32, #tpu.memory_space<vmem>>, %arg6: memref<9x8x24xbf16, #tpu.memory_space<vmem>>, %arg7: memref<8x1xf32, #tpu.memory_space<vmem>>, %arg8: memref<8x32xbf16, #tpu.memory_space<vmem>>, %arg9: memref<8x1xf32, #tpu.memory_space<vmem>>, %arg10: memref<1x8x256xf32, #tpu.memory_space<vmem>>, %arg11: memref<32x512xf32, #tpu.memory_space<vmem>>) attributes {dimension_semantics = [#tpu.dimension_semantics<parallel>], iteration_bounds = array<i64: 2>, scalar_prefetch = 0 : i64, scratch_operands = 1 : i64, tpu.core_type = #tpu.core_type<tc>, window_params = [{transform_indices = @transform_0, window_bounds = array<i64: 1, 8, 256>}, {pipeline_mode = #tpu.pipeline_mode<synchronous>, transform_indices = @transform_1, window_bounds = array<i64: 9, 8, 8>}, {pipeline_mode = #tpu.pipeline_mode<synchronous>, transform_indices = @transform_2, window_bounds = array<i64: 8, 1>}, {pipeline_mode = #tpu.pipeline_mode<synchronous>, transform_indices = @transform_3, window_bounds = array<i64: 9, 8, 16>}, {pipeline_mode = #tpu.pipeline_mode<synchronous>, transform_indices = @transform_4, window_bounds = array<i64: 8, 1>}, {pipeline_mode = #tpu.pipeline_mode<synchronous>, transform_indices = @transform_5, window_bounds = array<i64: 9, 8, 24>}, {pipeline_mode = #tpu.pipeline_mode<synchronous>, transform_indices = @transform_6, window_bounds = array<i64: 8, 1>}, {pipeline_mode = #tpu.pipeline_mode<synchronous>, transform_indices = @transform_7, window_bounds = array<i64: 8, 32>}, {pipeline_mode = #tpu.pipeline_mode<synchronous>, transform_indices = @transform_8, window_bounds = array<i64: 8, 1>}, {transform_indices = @transform_9, window_bounds = array<i64: 1, 8, 256>}]} {
    %cst = arith.constant 0.000000e+00 : f32
    %0 = vector.broadcast %cst : f32 to vector<32x128xf32>
    %c0 = arith.constant 0 : index
    %c0_0 = arith.constant 0 : index
    %1 = vector.load %arg11[%c0, %c0_0] : memref<32x512xf32, #tpu.memory_space<vmem>>, vector<32x128xf32>
    tpu.vector_store %arg11[%c0, %c0_0], %0 {strides = array<i32>} : memref<32x512xf32, #tpu.memory_space<vmem>>, vector<32x128xf32>,
    %c0_1 = arith.constant 0 : index
    %c384 = arith.constant 384 : index
    %2 = vector.load %arg11[%c0_1, %c384] : memref<32x512xf32, #tpu.memory_space<vmem>>, vector<32x128xf32>
    tpu.vector_store %arg11[%c0_1, %c384], %0 {strides = array<i32>} : memref<32x512xf32, #tpu.memory_space<vmem>>, vector<32x128xf32>,
    %c0_2 = arith.constant 0 : index
    %c0_3 = arith.constant 0 : index
    %c0_4 = arith.constant 0 : index
    %3 = vector.load %arg1[%c0_2, %c0_3, %c0_4] : memref<1x8x256xf32, #tpu.memory_space<vmem>>, vector<1x8x256xf32>
    %4 = vector.shape_cast %3 : vector<1x8x256xf32> to vector<8x256xf32>
    %c0_5 = arith.constant 0 : index
    %c128 = arith.constant 128 : index
    %5 = vector.load %arg11[%c0_5, %c128] : memref<32x512xf32, #tpu.memory_space<vmem>>, vector<8x256xf32>
    tpu.vector_store %arg11[%c0_5, %c128], %4 {strides = array<i32>} : memref<32x512xf32, #tpu.memory_space<vmem>>, vector<8x256xf32>,
    %6 = tpu.iota {dimensions = array<i32: 1>} : vector<1x256xi32>
    %c16_i32 = arith.constant 16 : i32
    %c0_i32 = arith.constant 0 : i32
    %7 = arith.cmpi eq, %c16_i32, %c0_i32 : i32
    %c1_i32 = arith.constant 1 : i32
    %8 = arith.select %7, %c1_i32, %c16_i32 : i32
    %9 = vector.broadcast %8 : i32 to vector<1x256xi32>
    %10 = arith.remsi %6, %9 : vector<1x256xi32>
    %c0_i32_6 = arith.constant 0 : i32
    %11 = vector.broadcast %c0_i32_6 : i32 to vector<1x256xi32>
    %12 = arith.cmpi ne, %10, %11 : vector<1x256xi32>
    %c0_i32_7 = arith.constant 0 : i32
    %13 = vector.broadcast %c0_i32_7 : i32 to vector<1x256xi32>
    %14 = arith.cmpi slt, %10, %13 : vector<1x256xi32>
    %c0_i32_8 = arith.constant 0 : i32
    %15 = arith.cmpi slt, %8, %c0_i32_8 : i32
    %16 = vector.broadcast %15 : i1 to vector<1x256xi1>
    %17 = vector.broadcast %16 : vector<1x256xi1> to vector<1x256xi1>
    %18 = arith.xori %14, %17 : vector<1x256xi1>
    %19 = arith.andi %18, %12 : vector<1x256xi1>
    %20 = vector.broadcast %8 : i32 to vector<1x256xi32>
    %21 = arith.addi %10, %20 : vector<1x256xi32>
    %22 = arith.select %19, %21, %10 : vector<1x256xi1>, vector<1x256xi32>
    %c-1_i32 = arith.constant -1 : i32
    %23 = vector.broadcast %c-1_i32 : i32 to vector<1x256xi32>
    %24 = arith.addi %22, %23 : vector<1x256xi32>
    %c0_i32_9 = arith.constant 0 : i32
    %25 = vector.broadcast %c0_i32_9 : i32 to vector<1x256xi32>
    %26 = arith.cmpi sge, %24, %25 : vector<1x256xi32>
    %c-1_i32_10 = arith.constant -1 : i32
    %27 = vector.broadcast %c-1_i32_10 : i32 to vector<1x256xi32>
    %28 = arith.addi %22, %27 : vector<1x256xi32>
    %c15_i32 = arith.constant 15 : i32
    %29 = vector.broadcast %c15_i32 : i32 to vector<1x256xi32>
    %30 = arith.cmpi sle, %28, %29 : vector<1x256xi32>
    %31 = arith.andi %26, %30 : vector<1x256xi1>
    %32 = arith.extui %31 : vector<1x256xi1> to vector<1x256xi32>
    %33 = arith.sitofp %32 : vector<1x256xi32> to vector<1x256xf32>
    %c1_i32_11 = arith.constant 1 : i32
    %34 = vector.broadcast %c1_i32_11 : i32 to vector<1x256xi32>
    %35 = arith.addi %22, %34 : vector<1x256xi32>
    %c0_i32_12 = arith.constant 0 : i32
    %36 = vector.broadcast %c0_i32_12 : i32 to vector<1x256xi32>
    %37 = arith.cmpi sge, %35, %36 : vector<1x256xi32>
    %c1_i32_13 = arith.constant 1 : i32
    %38 = vector.broadcast %c1_i32_13 : i32 to vector<1x256xi32>
    %39 = arith.addi %22, %38 : vector<1x256xi32>
    %c15_i32_14 = arith.constant 15 : i32
    %40 = vector.broadcast %c15_i32_14 : i32 to vector<1x256xi32>
    %41 = arith.cmpi sle, %39, %40 : vector<1x256xi32>
    %42 = arith.andi %37, %41 : vector<1x256xi1>
    %43 = arith.extui %42 : vector<1x256xi1> to vector<1x256xi32>
    %44 = arith.sitofp %43 : vector<1x256xi32> to vector<1x256xf32>
    %c0_15 = arith.constant 0 : index
    %c111 = arith.constant 111 : index
    %45 = vector.load %arg11[%c0_15, %c111] : memref<32x512xf32, #tpu.memory_space<vmem>>, vector<8x256xf32>
    %46 = arith.truncf %45 : vector<8x256xf32> to vector<8x256xbf16>
    %c0_16 = arith.constant 0 : index
    %c0_17 = arith.constant 0 : index
    %c0_18 = arith.constant 0 : index
    %47 = vector.load %arg2[%c0_16, %c0_17, %c0_18] : memref<9x8x8xbf16, #tpu.memory_space<vmem>>, vector<1x8x8xbf16>
    %48 = vector.shape_cast %47 : vector<1x8x8xbf16> to vector<8x8xbf16>
    %cst_19 = arith.constant dense<0.000000e+00> : vector<8x256xf32>
    %49 = tpu.matmul %48, %46, %cst_19 {dimension_numbers = #tpu.dot_dimension_numbers<[1], [0], [0], [1], [0, 0, 1, 1], [], []>} : vector<8x8xbf16>, vector<8x256xbf16>, vector<8x256xf32> -> vector<8x256xf32>
    %c0_20 = arith.constant 0 : index
    %c127 = arith.constant 127 : index
    %50 = vector.load %arg11[%c0_20, %c127] : memref<32x512xf32, #tpu.memory_space<vmem>>, vector<8x256xf32>
    %51 = arith.truncf %50 : vector<8x256xf32> to vector<8x256xbf16>
    %c3 = arith.constant 3 : index
    %c0_21 = arith.constant 0 : index
    %c0_22 = arith.constant 0 : index
    %52 = vector.load %arg2[%c3, %c0_21, %c0_22] : memref<9x8x8xbf16, #tpu.memory_space<vmem>>, vector<1x8x8xbf16>
    %53 = vector.shape_cast %52 : vector<1x8x8xbf16> to vector<8x8xbf16>
    %cst_23 = arith.constant dense<0.000000e+00> : vector<8x256xf32>
    %54 = tpu.matmul %53, %51, %cst_23 {dimension_numbers = #tpu.dot_dimension_numbers<[1], [0], [0], [1], [0, 0, 1, 1], [], []>} : vector<8x8xbf16>, vector<8x256xbf16>, vector<8x256xf32> -> vector<8x256xf32>
    %55 = arith.addf %49, %54 : vector<8x256xf32>
    %c0_24 = arith.constant 0 : index
    %c143 = arith.constant 143 : index
    %56 = vector.load %arg11[%c0_24, %c143] : memref<32x512xf32, #tpu.memory_space<vmem>>, vector<8x256xf32>
    %57 = arith.truncf %56 : vector<8x256xf32> to vector<8x256xbf16>
    %c6 = arith.constant 6 : index
    %c0_25 = arith.constant 0 : index
    %c0_26 = arith.constant 0 : index
    %58 = vector.load %arg2[%c6, %c0_25, %c0_26] : memref<9x8x8xbf16, #tpu.memory_space<vmem>>, vector<1x8x8xbf16>
    %59 = vector.shape_cast %58 : vector<1x8x8xbf16> to vector<8x8xbf16>
    %cst_27 = arith.constant dense<0.000000e+00> : vector<8x256xf32>
    %60 = tpu.matmul %59, %57, %cst_27 {dimension_numbers = #tpu.dot_dimension_numbers<[1], [0], [0], [1], [0, 0, 1, 1], [], []>} : vector<8x8xbf16>, vector<8x256xbf16>, vector<8x256xf32> -> vector<8x256xf32>
    %61 = arith.addf %55, %60 : vector<8x256xf32>
    %c0_28 = arith.constant 0 : index
    %c112 = arith.constant 112 : index
    %62 = vector.load %arg11[%c0_28, %c112] : memref<32x512xf32, #tpu.memory_space<vmem>>, vector<8x256xf32>
    %63 = arith.truncf %62 : vector<8x256xf32> to vector<8x256xbf16>
    %c1 = arith.constant 1 : index
    %c0_29 = arith.constant 0 : index
    %c0_30 = arith.constant 0 : index
    %64 = vector.load %arg2[%c1, %c0_29, %c0_30] : memref<9x8x8xbf16, #tpu.memory_space<vmem>>, vector<1x8x8xbf16>
    %65 = vector.shape_cast %64 : vector<1x8x8xbf16> to vector<8x8xbf16>
    %cst_31 = arith.constant dense<0.000000e+00> : vector<8x256xf32>
    %66 = tpu.matmul %65, %63, %cst_31 {dimension_numbers = #tpu.dot_dimension_numbers<[1], [0], [0], [1], [0, 0, 1, 1], [], []>} : vector<8x8xbf16>, vector<8x256xbf16>, vector<8x256xf32> -> vector<8x256xf32>
    %c0_32 = arith.constant 0 : index
    %c128_33 = arith.constant 128 : index
    %67 = vector.load %arg11[%c0_32, %c128_33] : memref<32x512xf32, #tpu.memory_space<vmem>>, vector<8x256xf32>
    %68 = arith.truncf %67 : vector<8x256xf32> to vector<8x256xbf16>
    %c4 = arith.constant 4 : index
    %c0_34 = arith.constant 0 : index
    %c0_35 = arith.constant 0 : index
    %69 = vector.load %arg2[%c4, %c0_34, %c0_35] : memref<9x8x8xbf16, #tpu.memory_space<vmem>>, vector<1x8x8xbf16>
    %70 = vector.shape_cast %69 : vector<1x8x8xbf16> to vector<8x8xbf16>
    %cst_36 = arith.constant dense<0.000000e+00> : vector<8x256xf32>
    %71 = tpu.matmul %70, %68, %cst_36 {dimension_numbers = #tpu.dot_dimension_numbers<[1], [0], [0], [1], [0, 0, 1, 1], [], []>} : vector<8x8xbf16>, vector<8x256xbf16>, vector<8x256xf32> -> vector<8x256xf32>
    %72 = arith.addf %66, %71 : vector<8x256xf32>
    %c0_37 = arith.constant 0 : index
    %c144 = arith.constant 144 : index
    %73 = vector.load %arg11[%c0_37, %c144] : memref<32x512xf32, #tpu.memory_space<vmem>>, vector<8x256xf32>
    %74 = arith.truncf %73 : vector<8x256xf32> to vector<8x256xbf16>
    %c7 = arith.constant 7 : index
    %c0_38 = arith.constant 0 : index
    %c0_39 = arith.constant 0 : index
    %75 = vector.load %arg2[%c7, %c0_38, %c0_39] : memref<9x8x8xbf16, #tpu.memory_space<vmem>>, vector<1x8x8xbf16>
    %76 = vector.shape_cast %75 : vector<1x8x8xbf16> to vector<8x8xbf16>
    %cst_40 = arith.constant dense<0.000000e+00> : vector<8x256xf32>
    %77 = tpu.matmul %76, %74, %cst_40 {dimension_numbers = #tpu.dot_dimension_numbers<[1], [0], [0], [1], [0, 0, 1, 1], [], []>} : vector<8x8xbf16>, vector<8x256xbf16>, vector<8x256xf32> -> vector<8x256xf32>
    %78 = arith.addf %72, %77 : vector<8x256xf32>
    %c0_41 = arith.constant 0 : index
    %c113 = arith.constant 113 : index
    %79 = vector.load %arg11[%c0_41, %c113] : memref<32x512xf32, #tpu.memory_space<vmem>>, vector<8x256xf32>
    %80 = arith.truncf %79 : vector<8x256xf32> to vector<8x256xbf16>
    %c2 = arith.constant 2 : index
    %c0_42 = arith.constant 0 : index
    %c0_43 = arith.constant 0 : index
    %81 = vector.load %arg2[%c2, %c0_42, %c0_43] : memref<9x8x8xbf16, #tpu.memory_space<vmem>>, vector<1x8x8xbf16>
    %82 = vector.shape_cast %81 : vector<1x8x8xbf16> to vector<8x8xbf16>
    %cst_44 = arith.constant dense<0.000000e+00> : vector<8x256xf32>
    %83 = tpu.matmul %82, %80, %cst_44 {dimension_numbers = #tpu.dot_dimension_numbers<[1], [0], [0], [1], [0, 0, 1, 1], [], []>} : vector<8x8xbf16>, vector<8x256xbf16>, vector<8x256xf32> -> vector<8x256xf32>
    %c0_45 = arith.constant 0 : index
    %c129 = arith.constant 129 : index
    %84 = vector.load %arg11[%c0_45, %c129] : memref<32x512xf32, #tpu.memory_space<vmem>>, vector<8x256xf32>
    %85 = arith.truncf %84 : vector<8x256xf32> to vector<8x256xbf16>
    %c5 = arith.constant 5 : index
    %c0_46 = arith.constant 0 : index
    %c0_47 = arith.constant 0 : index
    %86 = vector.load %arg2[%c5, %c0_46, %c0_47] : memref<9x8x8xbf16, #tpu.memory_space<vmem>>, vector<1x8x8xbf16>
    %87 = vector.shape_cast %86 : vector<1x8x8xbf16> to vector<8x8xbf16>
    %cst_48 = arith.constant dense<0.000000e+00> : vector<8x256xf32>
    %88 = tpu.matmul %87, %85, %cst_48 {dimension_numbers = #tpu.dot_dimension_numbers<[1], [0], [0], [1], [0, 0, 1, 1], [], []>} : vector<8x8xbf16>, vector<8x256xbf16>, vector<8x256xf32> -> vector<8x256xf32>
    %89 = arith.addf %83, %88 : vector<8x256xf32>
    %c0_49 = arith.constant 0 : index
    %c145 = arith.constant 145 : index
    %90 = vector.load %arg11[%c0_49, %c145] : memref<32x512xf32, #tpu.memory_space<vmem>>, vector<8x256xf32>
    %91 = arith.truncf %90 : vector<8x256xf32> to vector<8x256xbf16>
    %c8 = arith.constant 8 : index
    %c0_50 = arith.constant 0 : index
    %c0_51 = arith.constant 0 : index
    %92 = vector.load %arg2[%c8, %c0_50, %c0_51] : memref<9x8x8xbf16, #tpu.memory_space<vmem>>, vector<1x8x8xbf16>
    %93 = vector.shape_cast %92 : vector<1x8x8xbf16> to vector<8x8xbf16>
    %cst_52 = arith.constant dense<0.000000e+00> : vector<8x256xf32>
    %94 = tpu.matmul %93, %91, %cst_52 {dimension_numbers = #tpu.dot_dimension_numbers<[1], [0], [0], [1], [0, 0, 1, 1], [], []>} : vector<8x8xbf16>, vector<8x256xbf16>, vector<8x256xf32> -> vector<8x256xf32>
    %95 = arith.addf %89, %94 : vector<8x256xf32>
    %c0_53 = arith.constant 0 : index
    %c0_54 = arith.constant 0 : index
    %96 = vector.load %arg3[%c0_53, %c0_54] : memref<8x1xf32, #tpu.memory_space<vmem>>, vector<8x1xf32>
    %97 = vector.broadcast %96 : vector<8x1xf32> to vector<8x256xf32>
    %98 = arith.addf %78, %97 : vector<8x256xf32>
    %99 = vector.broadcast %33 : vector<1x256xf32> to vector<8x256xf32>
    %100 = arith.mulf %99, %61 : vector<8x256xf32>
    %101 = arith.addf %98, %100 : vector<8x256xf32>
    %102 = vector.broadcast %44 : vector<1x256xf32> to vector<8x256xf32>
    %103 = arith.mulf %102, %95 : vector<8x256xf32>
    %104 = arith.addf %101, %103 : vector<8x256xf32>
    %cst_55 = arith.constant 0.000000e+00 : f32
    %105 = vector.broadcast %cst_55 : f32 to vector<8x256xf32>
    %106 = arith.maximumf %104, %105 : vector<8x256xf32>
    %c8_56 = arith.constant 8 : index
    %c128_57 = arith.constant 128 : index
    %107 = vector.load %arg11[%c8_56, %c128_57] : memref<32x512xf32, #tpu.memory_space<vmem>>, vector<8x256xf32>
    tpu.vector_store %arg11[%c8_56, %c128_57], %106 {strides = array<i32>} : memref<32x512xf32, #tpu.memory_space<vmem>>, vector<8x256xf32>,
    %c0_58 = arith.constant 0 : index
    %c111_59 = arith.constant 111 : index
    %108 = vector.load %arg11[%c0_58, %c111_59] : memref<32x512xf32, #tpu.memory_space<vmem>>, vector<16x256xf32>
    %109 = arith.truncf %108 : vector<16x256xf32> to vector<16x256xbf16>
    %c0_60 = arith.constant 0 : index
    %c0_61 = arith.constant 0 : index
    %c0_62 = arith.constant 0 : index
    %110 = vector.load %arg4[%c0_60, %c0_61, %c0_62] : memref<9x8x16xbf16, #tpu.memory_space<vmem>>, vector<1x8x16xbf16>
    %111 = vector.shape_cast %110 : vector<1x8x16xbf16> to vector<8x16xbf16>
    %cst_63 = arith.constant dense<0.000000e+00> : vector<8x256xf32>
    %112 = tpu.matmul %111, %109, %cst_63 {dimension_numbers = #tpu.dot_dimension_numbers<[1], [0], [0], [1], [0, 0, 1, 1], [], []>} : vector<8x16xbf16>, vector<16x256xbf16>, vector<8x256xf32> -> vector<8x256xf32>
    %c0_64 = arith.constant 0 : index
    %c127_65 = arith.constant 127 : index
    %113 = vector.load %arg11[%c0_64, %c127_65] : memref<32x512xf32, #tpu.memory_space<vmem>>, vector<16x256xf32>
    %114 = arith.truncf %113 : vector<16x256xf32> to vector<16x256xbf16>
    %c3_66 = arith.constant 3 : index
    %c0_67 = arith.constant 0 : index
    %c0_68 = arith.constant 0 : index
    %115 = vector.load %arg4[%c3_66, %c0_67, %c0_68] : memref<9x8x16xbf16, #tpu.memory_space<vmem>>, vector<1x8x16xbf16>
    %116 = vector.shape_cast %115 : vector<1x8x16xbf16> to vector<8x16xbf16>
    %cst_69 = arith.constant dense<0.000000e+00> : vector<8x256xf32>
    %117 = tpu.matmul %116, %114, %cst_69 {dimension_numbers = #tpu.dot_dimension_numbers<[1], [0], [0], [1], [0, 0, 1, 1], [], []>} : vector<8x16xbf16>, vector<16x256xbf16>, vector<8x256xf32> -> vector<8x256xf32>
    %118 = arith.addf %112, %117 : vector<8x256xf32>
    %c0_70 = arith.constant 0 : index
    %c143_71 = arith.constant 143 : index
    %119 = vector.load %arg11[%c0_70, %c143_71] : memref<32x512xf32, #tpu.memory_space<vmem>>, vector<16x256xf32>
    %120 = arith.truncf %119 : vector<16x256xf32> to vector<16x256xbf16>
    %c6_72 = arith.constant 6 : index
    %c0_73 = arith.constant 0 : index
    %c0_74 = arith.constant 0 : index
    %121 = vector.load %arg4[%c6_72, %c0_73, %c0_74] : memref<9x8x16xbf16, #tpu.memory_space<vmem>>, vector<1x8x16xbf16>
    %122 = vector.shape_cast %121 : vector<1x8x16xbf16> to vector<8x16xbf16>
    %cst_75 = arith.constant dense<0.000000e+00> : vector<8x256xf32>
    %123 = tpu.matmul %122, %120, %cst_75 {dimension_numbers = #tpu.dot_dimension_numbers<[1], [0], [0], [1], [0, 0, 1, 1], [], []>} : vector<8x16xbf16>, vector<16x256xbf16>, vector<8x256xf32> -> vector<8x256xf32>
    %124 = arith.addf %118, %123 : vector<8x256xf32>
    %c0_76 = arith.constant 0 : index
    %c112_77 = arith.constant 112 : index
    %125 = vector.load %arg11[%c0_76, %c112_77] : memref<32x512xf32, #tpu.memory_space<vmem>>, vector<16x256xf32>
    %126 = arith.truncf %125 : vector<16x256xf32> to vector<16x256xbf16>
    %c1_78 = arith.constant 1 : index
    %c0_79 = arith.constant 0 : index
    %c0_80 = arith.constant 0 : index
    %127 = vector.load %arg4[%c1_78, %c0_79, %c0_80] : memref<9x8x16xbf16, #tpu.memory_space<vmem>>, vector<1x8x16xbf16>
    %128 = vector.shape_cast %127 : vector<1x8x16xbf16> to vector<8x16xbf16>
    %cst_81 = arith.constant dense<0.000000e+00> : vector<8x256xf32>
    %129 = tpu.matmul %128, %126, %cst_81 {dimension_numbers = #tpu.dot_dimension_numbers<[1], [0], [0], [1], [0, 0, 1, 1], [], []>} : vector<8x16xbf16>, vector<16x256xbf16>, vector<8x256xf32> -> vector<8x256xf32>
    %c0_82 = arith.constant 0 : index
    %c128_83 = arith.constant 128 : index
    %130 = vector.load %arg11[%c0_82, %c128_83] : memref<32x512xf32, #tpu.memory_space<vmem>>, vector<16x256xf32>
    %131 = arith.truncf %130 : vector<16x256xf32> to vector<16x256xbf16>
    %c4_84 = arith.constant 4 : index
    %c0_85 = arith.constant 0 : index
    %c0_86 = arith.constant 0 : index
    %132 = vector.load %arg4[%c4_84, %c0_85, %c0_86] : memref<9x8x16xbf16, #tpu.memory_space<vmem>>, vector<1x8x16xbf16>
    %133 = vector.shape_cast %132 : vector<1x8x16xbf16> to vector<8x16xbf16>
    %cst_87 = arith.constant dense<0.000000e+00> : vector<8x256xf32>
    %134 = tpu.matmul %133, %131, %cst_87 {dimension_numbers = #tpu.dot_dimension_numbers<[1], [0], [0], [1], [0, 0, 1, 1], [], []>} : vector<8x16xbf16>, vector<16x256xbf16>, vector<8x256xf32> -> vector<8x256xf32>
    %135 = arith.addf %129, %134 : vector<8x256xf32>
    %c0_88 = arith.constant 0 : index
    %c144_89 = arith.constant 144 : index
    %136 = vector.load %arg11[%c0_88, %c144_89] : memref<32x512xf32, #tpu.memory_space<vmem>>, vector<16x256xf32>
    %137 = arith.truncf %136 : vector<16x256xf32> to vector<16x256xbf16>
    %c7_90 = arith.constant 7 : index
    %c0_91 = arith.constant 0 : index
    %c0_92 = arith.constant 0 : index
    %138 = vector.load %arg4[%c7_90, %c0_91, %c0_92] : memref<9x8x16xbf16, #tpu.memory_space<vmem>>, vector<1x8x16xbf16>
    %139 = vector.shape_cast %138 : vector<1x8x16xbf16> to vector<8x16xbf16>
    %cst_93 = arith.constant dense<0.000000e+00> : vector<8x256xf32>
    %140 = tpu.matmul %139, %137, %cst_93 {dimension_numbers = #tpu.dot_dimension_numbers<[1], [0], [0], [1], [0, 0, 1, 1], [], []>} : vector<8x16xbf16>, vector<16x256xbf16>, vector<8x256xf32> -> vector<8x256xf32>
    %141 = arith.addf %135, %140 : vector<8x256xf32>
    %c0_94 = arith.constant 0 : index
    %c113_95 = arith.constant 113 : index
    %142 = vector.load %arg11[%c0_94, %c113_95] : memref<32x512xf32, #tpu.memory_space<vmem>>, vector<16x256xf32>
    %143 = arith.truncf %142 : vector<16x256xf32> to vector<16x256xbf16>
    %c2_96 = arith.constant 2 : index
    %c0_97 = arith.constant 0 : index
    %c0_98 = arith.constant 0 : index
    %144 = vector.load %arg4[%c2_96, %c0_97, %c0_98] : memref<9x8x16xbf16, #tpu.memory_space<vmem>>, vector<1x8x16xbf16>
    %145 = vector.shape_cast %144 : vector<1x8x16xbf16> to vector<8x16xbf16>
    %cst_99 = arith.constant dense<0.000000e+00> : vector<8x256xf32>
    %146 = tpu.matmul %145, %143, %cst_99 {dimension_numbers = #tpu.dot_dimension_numbers<[1], [0], [0], [1], [0, 0, 1, 1], [], []>} : vector<8x16xbf16>, vector<16x256xbf16>, vector<8x256xf32> -> vector<8x256xf32>
    %c0_100 = arith.constant 0 : index
    %c129_101 = arith.constant 129 : index
    %147 = vector.load %arg11[%c0_100, %c129_101] : memref<32x512xf32, #tpu.memory_space<vmem>>, vector<16x256xf32>
    %148 = arith.truncf %147 : vector<16x256xf32> to vector<16x256xbf16>
    %c5_102 = arith.constant 5 : index
    %c0_103 = arith.constant 0 : index
    %c0_104 = arith.constant 0 : index
    %149 = vector.load %arg4[%c5_102, %c0_103, %c0_104] : memref<9x8x16xbf16, #tpu.memory_space<vmem>>, vector<1x8x16xbf16>
    %150 = vector.shape_cast %149 : vector<1x8x16xbf16> to vector<8x16xbf16>
    %cst_105 = arith.constant dense<0.000000e+00> : vector<8x256xf32>
    %151 = tpu.matmul %150, %148, %cst_105 {dimension_numbers = #tpu.dot_dimension_numbers<[1], [0], [0], [1], [0, 0, 1, 1], [], []>} : vector<8x16xbf16>, vector<16x256xbf16>, vector<8x256xf32> -> vector<8x256xf32>
    %152 = arith.addf %146, %151 : vector<8x256xf32>
    %c0_106 = arith.constant 0 : index
    %c145_107 = arith.constant 145 : index
    %153 = vector.load %arg11[%c0_106, %c145_107] : memref<32x512xf32, #tpu.memory_space<vmem>>, vector<16x256xf32>
    %154 = arith.truncf %153 : vector<16x256xf32> to vector<16x256xbf16>
    %c8_108 = arith.constant 8 : index
    %c0_109 = arith.constant 0 : index
    %c0_110 = arith.constant 0 : index
    %155 = vector.load %arg4[%c8_108, %c0_109, %c0_110] : memref<9x8x16xbf16, #tpu.memory_space<vmem>>, vector<1x8x16xbf16>
    %156 = vector.shape_cast %155 : vector<1x8x16xbf16> to vector<8x16xbf16>
    %cst_111 = arith.constant dense<0.000000e+00> : vector<8x256xf32>
    %157 = tpu.matmul %156, %154, %cst_111 {dimension_numbers = #tpu.dot_dimension_numbers<[1], [0], [0], [1], [0, 0, 1, 1], [], []>} : vector<8x16xbf16>, vector<16x256xbf16>, vector<8x256xf32> -> vector<8x256xf32>
    %158 = arith.addf %152, %157 : vector<8x256xf32>
    %c0_112 = arith.constant 0 : index
    %c0_113 = arith.constant 0 : index
    %159 = vector.load %arg5[%c0_112, %c0_113] : memref<8x1xf32, #tpu.memory_space<vmem>>, vector<8x1xf32>
    %160 = vector.broadcast %159 : vector<8x1xf32> to vector<8x256xf32>
    %161 = arith.addf %141, %160 : vector<8x256xf32>
    %162 = vector.broadcast %33 : vector<1x256xf32> to vector<8x256xf32>
    %163 = arith.mulf %162, %124 : vector<8x256xf32>
    %164 = arith.addf %161, %163 : vector<8x256xf32>
    %165 = vector.broadcast %44 : vector<1x256xf32> to vector<8x256xf32>
    %166 = arith.mulf %165, %158 : vector<8x256xf32>
    %167 = arith.addf %164, %166 : vector<8x256xf32>
    %cst_114 = arith.constant 0.000000e+00 : f32
    %168 = vector.broadcast %cst_114 : f32 to vector<8x256xf32>
    %169 = arith.maximumf %167, %168 : vector<8x256xf32>
    %c16 = arith.constant 16 : index
    %c128_115 = arith.constant 128 : index
    %170 = vector.load %arg11[%c16, %c128_115] : memref<32x512xf32, #tpu.memory_space<vmem>>, vector<8x256xf32>
    tpu.vector_store %arg11[%c16, %c128_115], %169 {strides = array<i32>} : memref<32x512xf32, #tpu.memory_space<vmem>>, vector<8x256xf32>,
    %c0_116 = arith.constant 0 : index
    %c111_117 = arith.constant 111 : index
    %171 = vector.load %arg11[%c0_116, %c111_117] : memref<32x512xf32, #tpu.memory_space<vmem>>, vector<24x256xf32>
    %172 = arith.truncf %171 : vector<24x256xf32> to vector<24x256xbf16>
    %c0_118 = arith.constant 0 : index
    %c0_119 = arith.constant 0 : index
    %c0_120 = arith.constant 0 : index
    %173 = vector.load %arg6[%c0_118, %c0_119, %c0_120] : memref<9x8x24xbf16, #tpu.memory_space<vmem>>, vector<1x8x24xbf16>
    %174 = vector.shape_cast %173 : vector<1x8x24xbf16> to vector<8x24xbf16>
    %cst_121 = arith.constant dense<0.000000e+00> : vector<8x256xf32>
    %175 = tpu.matmul %174, %172, %cst_121 {dimension_numbers = #tpu.dot_dimension_numbers<[1], [0], [0], [1], [0, 0, 1, 1], [], []>} : vector<8x24xbf16>, vector<24x256xbf16>, vector<8x256xf32> -> vector<8x256xf32>
    %c0_122 = arith.constant 0 : index
    %c127_123 = arith.constant 127 : index
    %176 = vector.load %arg11[%c0_122, %c127_123] : memref<32x512xf32, #tpu.memory_space<vmem>>, vector<24x256xf32>
    %177 = arith.truncf %176 : vector<24x256xf32> to vector<24x256xbf16>
    %c3_124 = arith.constant 3 : index
    %c0_125 = arith.constant 0 : index
    %c0_126 = arith.constant 0 : index
    %178 = vector.load %arg6[%c3_124, %c0_125, %c0_126] : memref<9x8x24xbf16, #tpu.memory_space<vmem>>, vector<1x8x24xbf16>
    %179 = vector.shape_cast %178 : vector<1x8x24xbf16> to vector<8x24xbf16>
    %cst_127 = arith.constant dense<0.000000e+00> : vector<8x256xf32>
    %180 = tpu.matmul %179, %177, %cst_127 {dimension_numbers = #tpu.dot_dimension_numbers<[1], [0], [0], [1], [0, 0, 1, 1], [], []>} : vector<8x24xbf16>, vector<24x256xbf16>, vector<8x256xf32> -> vector<8x256xf32>
    %181 = arith.addf %175, %180 : vector<8x256xf32>
    %c0_128 = arith.constant 0 : index
    %c143_129 = arith.constant 143 : index
    %182 = vector.load %arg11[%c0_128, %c143_129] : memref<32x512xf32, #tpu.memory_space<vmem>>, vector<24x256xf32>
    %183 = arith.truncf %182 : vector<24x256xf32> to vector<24x256xbf16>
    %c6_130 = arith.constant 6 : index
    %c0_131 = arith.constant 0 : index
    %c0_132 = arith.constant 0 : index
    %184 = vector.load %arg6[%c6_130, %c0_131, %c0_132] : memref<9x8x24xbf16, #tpu.memory_space<vmem>>, vector<1x8x24xbf16>
    %185 = vector.shape_cast %184 : vector<1x8x24xbf16> to vector<8x24xbf16>
    %cst_133 = arith.constant dense<0.000000e+00> : vector<8x256xf32>
    %186 = tpu.matmul %185, %183, %cst_133 {dimension_numbers = #tpu.dot_dimension_numbers<[1], [0], [0], [1], [0, 0, 1, 1], [], []>} : vector<8x24xbf16>, vector<24x256xbf16>, vector<8x256xf32> -> vector<8x256xf32>
    %187 = arith.addf %181, %186 : vector<8x256xf32>
    %c0_134 = arith.constant 0 : index
    %c112_135 = arith.constant 112 : index
    %188 = vector.load %arg11[%c0_134, %c112_135] : memref<32x512xf32, #tpu.memory_space<vmem>>, vector<24x256xf32>
    %189 = arith.truncf %188 : vector<24x256xf32> to vector<24x256xbf16>
    %c1_136 = arith.constant 1 : index
    %c0_137 = arith.constant 0 : index
    %c0_138 = arith.constant 0 : index
    %190 = vector.load %arg6[%c1_136, %c0_137, %c0_138] : memref<9x8x24xbf16, #tpu.memory_space<vmem>>, vector<1x8x24xbf16>
    %191 = vector.shape_cast %190 : vector<1x8x24xbf16> to vector<8x24xbf16>
    %cst_139 = arith.constant dense<0.000000e+00> : vector<8x256xf32>
    %192 = tpu.matmul %191, %189, %cst_139 {dimension_numbers = #tpu.dot_dimension_numbers<[1], [0], [0], [1], [0, 0, 1, 1], [], []>} : vector<8x24xbf16>, vector<24x256xbf16>, vector<8x256xf32> -> vector<8x256xf32>
    %c0_140 = arith.constant 0 : index
    %c128_141 = arith.constant 128 : index
    %193 = vector.load %arg11[%c0_140, %c128_141] : memref<32x512xf32, #tpu.memory_space<vmem>>, vector<24x256xf32>
    %194 = arith.truncf %193 : vector<24x256xf32> to vector<24x256xbf16>
    %c4_142 = arith.constant 4 : index
    %c0_143 = arith.constant 0 : index
    %c0_144 = arith.constant 0 : index
    %195 = vector.load %arg6[%c4_142, %c0_143, %c0_144] : memref<9x8x24xbf16, #tpu.memory_space<vmem>>, vector<1x8x24xbf16>
    %196 = vector.shape_cast %195 : vector<1x8x24xbf16> to vector<8x24xbf16>
    %cst_145 = arith.constant dense<0.000000e+00> : vector<8x256xf32>
    %197 = tpu.matmul %196, %194, %cst_145 {dimension_numbers = #tpu.dot_dimension_numbers<[1], [0], [0], [1], [0, 0, 1, 1], [], []>} : vector<8x24xbf16>, vector<24x256xbf16>, vector<8x256xf32> -> vector<8x256xf32>
    %198 = arith.addf %192, %197 : vector<8x256xf32>
    %c0_146 = arith.constant 0 : index
    %c144_147 = arith.constant 144 : index
    %199 = vector.load %arg11[%c0_146, %c144_147] : memref<32x512xf32, #tpu.memory_space<vmem>>, vector<24x256xf32>
    %200 = arith.truncf %199 : vector<24x256xf32> to vector<24x256xbf16>
    %c7_148 = arith.constant 7 : index
    %c0_149 = arith.constant 0 : index
    %c0_150 = arith.constant 0 : index
    %201 = vector.load %arg6[%c7_148, %c0_149, %c0_150] : memref<9x8x24xbf16, #tpu.memory_space<vmem>>, vector<1x8x24xbf16>
    %202 = vector.shape_cast %201 : vector<1x8x24xbf16> to vector<8x24xbf16>
    %cst_151 = arith.constant dense<0.000000e+00> : vector<8x256xf32>
    %203 = tpu.matmul %202, %200, %cst_151 {dimension_numbers = #tpu.dot_dimension_numbers<[1], [0], [0], [1], [0, 0, 1, 1], [], []>} : vector<8x24xbf16>, vector<24x256xbf16>, vector<8x256xf32> -> vector<8x256xf32>
    %204 = arith.addf %198, %203 : vector<8x256xf32>
    %c0_152 = arith.constant 0 : index
    %c113_153 = arith.constant 113 : index
    %205 = vector.load %arg11[%c0_152, %c113_153] : memref<32x512xf32, #tpu.memory_space<vmem>>, vector<24x256xf32>
    %206 = arith.truncf %205 : vector<24x256xf32> to vector<24x256xbf16>
    %c2_154 = arith.constant 2 : index
    %c0_155 = arith.constant 0 : index
    %c0_156 = arith.constant 0 : index
    %207 = vector.load %arg6[%c2_154, %c0_155, %c0_156] : memref<9x8x24xbf16, #tpu.memory_space<vmem>>, vector<1x8x24xbf16>
    %208 = vector.shape_cast %207 : vector<1x8x24xbf16> to vector<8x24xbf16>
    %cst_157 = arith.constant dense<0.000000e+00> : vector<8x256xf32>
    %209 = tpu.matmul %208, %206, %cst_157 {dimension_numbers = #tpu.dot_dimension_numbers<[1], [0], [0], [1], [0, 0, 1, 1], [], []>} : vector<8x24xbf16>, vector<24x256xbf16>, vector<8x256xf32> -> vector<8x256xf32>
    %c0_158 = arith.constant 0 : index
    %c129_159 = arith.constant 129 : index
    %210 = vector.load %arg11[%c0_158, %c129_159] : memref<32x512xf32, #tpu.memory_space<vmem>>, vector<24x256xf32>
    %211 = arith.truncf %210 : vector<24x256xf32> to vector<24x256xbf16>
    %c5_160 = arith.constant 5 : index
    %c0_161 = arith.constant 0 : index
    %c0_162 = arith.constant 0 : index
    %212 = vector.load %arg6[%c5_160, %c0_161, %c0_162] : memref<9x8x24xbf16, #tpu.memory_space<vmem>>, vector<1x8x24xbf16>
    %213 = vector.shape_cast %212 : vector<1x8x24xbf16> to vector<8x24xbf16>
    %cst_163 = arith.constant dense<0.000000e+00> : vector<8x256xf32>
    %214 = tpu.matmul %213, %211, %cst_163 {dimension_numbers = #tpu.dot_dimension_numbers<[1], [0], [0], [1], [0, 0, 1, 1], [], []>} : vector<8x24xbf16>, vector<24x256xbf16>, vector<8x256xf32> -> vector<8x256xf32>
    %215 = arith.addf %209, %214 : vector<8x256xf32>
    %c0_164 = arith.constant 0 : index
    %c145_165 = arith.constant 145 : index
    %216 = vector.load %arg11[%c0_164, %c145_165] : memref<32x512xf32, #tpu.memory_space<vmem>>, vector<24x256xf32>
    %217 = arith.truncf %216 : vector<24x256xf32> to vector<24x256xbf16>
    %c8_166 = arith.constant 8 : index
    %c0_167 = arith.constant 0 : index
    %c0_168 = arith.constant 0 : index
    %218 = vector.load %arg6[%c8_166, %c0_167, %c0_168] : memref<9x8x24xbf16, #tpu.memory_space<vmem>>, vector<1x8x24xbf16>
    %219 = vector.shape_cast %218 : vector<1x8x24xbf16> to vector<8x24xbf16>
    %cst_169 = arith.constant dense<0.000000e+00> : vector<8x256xf32>
    %220 = tpu.matmul %219, %217, %cst_169 {dimension_numbers = #tpu.dot_dimension_numbers<[1], [0], [0], [1], [0, 0, 1, 1], [], []>} : vector<8x24xbf16>, vector<24x256xbf16>, vector<8x256xf32> -> vector<8x256xf32>
    %221 = arith.addf %215, %220 : vector<8x256xf32>
    %c0_170 = arith.constant 0 : index
    %c0_171 = arith.constant 0 : index
    %222 = vector.load %arg7[%c0_170, %c0_171] : memref<8x1xf32, #tpu.memory_space<vmem>>, vector<8x1xf32>
    %223 = vector.broadcast %222 : vector<8x1xf32> to vector<8x256xf32>
    %224 = arith.addf %204, %223 : vector<8x256xf32>
    %225 = vector.broadcast %33 : vector<1x256xf32> to vector<8x256xf32>
    %226 = arith.mulf %225, %187 : vector<8x256xf32>
    %227 = arith.addf %224, %226 : vector<8x256xf32>
    %228 = vector.broadcast %44 : vector<1x256xf32> to vector<8x256xf32>
    %229 = arith.mulf %228, %221 : vector<8x256xf32>
    %230 = arith.addf %227, %229 : vector<8x256xf32>
    %cst_172 = arith.constant 0.000000e+00 : f32
    %231 = vector.broadcast %cst_172 : f32 to vector<8x256xf32>
    %232 = arith.maximumf %230, %231 : vector<8x256xf32>
    %c24 = arith.constant 24 : index
    %c128_173 = arith.constant 128 : index
    %233 = vector.load %arg11[%c24, %c128_173] : memref<32x512xf32, #tpu.memory_space<vmem>>, vector<8x256xf32>
    tpu.vector_store %arg11[%c24, %c128_173], %232 {strides = array<i32>} : memref<32x512xf32, #tpu.memory_space<vmem>>, vector<8x256xf32>,
    %c0_174 = arith.constant 0 : index
    %c128_175 = arith.constant 128 : index
    %234 = vector.load %arg11[%c0_174, %c128_175] : memref<32x512xf32, #tpu.memory_space<vmem>>, vector<32x256xf32>
    %235 = arith.truncf %234 : vector<32x256xf32> to vector<32x256xbf16>
    %c0_176 = arith.constant 0 : index
    %c0_177 = arith.constant 0 : index
    %236 = vector.load %arg8[%c0_176, %c0_177] : memref<8x32xbf16, #tpu.memory_space<vmem>>, vector<8x32xbf16>
    %cst_178 = arith.constant dense<0.000000e+00> : vector<8x256xf32>
    %237 = tpu.matmul %236, %235, %cst_178 {dimension_numbers = #tpu.dot_dimension_numbers<[1], [0], [0], [1], [0, 0, 1, 1], [], []>} : vector<8x32xbf16>, vector<32x256xbf16>, vector<8x256xf32> -> vector<8x256xf32>
    %c0_179 = arith.constant 0 : index
    %c0_180 = arith.constant 0 : index
    %238 = vector.load %arg9[%c0_179, %c0_180] : memref<8x1xf32, #tpu.memory_space<vmem>>, vector<8x1xf32>
    %239 = vector.broadcast %238 : vector<8x1xf32> to vector<8x256xf32>
    %240 = arith.addf %237, %239 : vector<8x256xf32>
    %c0_181 = arith.constant 0 : index
    %c0_182 = arith.constant 0 : index
    %c0_183 = arith.constant 0 : index
    %241 = vector.load %arg1[%c0_181, %c0_182, %c0_183] : memref<1x8x256xf32, #tpu.memory_space<vmem>>, vector<1x8x256xf32>
    %242 = vector.shape_cast %241 : vector<1x8x256xf32> to vector<8x256xf32>
    %243 = arith.addf %240, %242 : vector<8x256xf32>
    %c0_184 = arith.constant 0 : index
    %c0_185 = arith.constant 0 : index
    %c0_186 = arith.constant 0 : index
    %244 = vector.load %arg10[%c0_184, %c0_185, %c0_186] : memref<1x8x256xf32, #tpu.memory_space<vmem>>, vector<1x8x256xf32>
    %245 = vector.shape_cast %244 : vector<1x8x256xf32> to vector<8x256xf32>
    %246 = vector.shape_cast %243 : vector<8x256xf32> to vector<1x8x256xf32>
    tpu.vector_store %arg10[%c0_184, %c0_185, %c0_186], %246 {strides = array<i32>} : memref<1x8x256xf32, #tpu.memory_space<vmem>>, vector<1x8x256xf32>,
    return
  }
  func.func @transform_0(%arg0: i32) -> (i32, i32, i32) {
    %c0_i32 = arith.constant 0 : i32
    %c0_i32_0 = arith.constant 0 : i32
    %c0_i32_1 = arith.constant 0 : i32
    return %arg0, %c0_i32, %c0_i32_0 : i32, i32, i32
  }
  func.func @transform_1(%arg0: i32) -> (i32, i32, i32) {
    %c0_i32 = arith.constant 0 : i32
    %c0_i32_0 = arith.constant 0 : i32
    %c0_i32_1 = arith.constant 0 : i32
    %c0_i32_2 = arith.constant 0 : i32
    return %c0_i32, %c0_i32_0, %c0_i32_1 : i32, i32, i32
  }
  func.func @transform_2(%arg0: i32) -> (i32, i32) {
    %c0_i32 = arith.constant 0 : i32
    %c0_i32_0 = arith.constant 0 : i32
    %c0_i32_1 = arith.constant 0 : i32
    return %c0_i32, %c0_i32_0 : i32, i32
  }
  func.func @transform_3(%arg0: i32) -> (i32, i32, i32) {
    %c0_i32 = arith.constant 0 : i32
    %c0_i32_0 = arith.constant 0 : i32
    %c0_i32_1 = arith.constant 0 : i32
    %c0_i32_2 = arith.constant 0 : i32
    return %c0_i32, %c0_i32_0, %c0_i32_1 : i32, i32, i32
  }
  func.func @transform_4(%arg0: i32) -> (i32, i32) {
    %c0_i32 = arith.constant 0 : i32
    %c0_i32_0 = arith.constant 0 : i32
    %c0_i32_1 = arith.constant 0 : i32
    return %c0_i32, %c0_i32_0 : i32, i32
  }
  func.func @transform_5(%arg0: i32) -> (i32, i32, i32) {
    %c0_i32 = arith.constant 0 : i32
    %c0_i32_0 = arith.constant 0 : i32
    %c0_i32_1 = arith.constant 0 : i32
    %c0_i32_2 = arith.constant 0 : i32
    return %c0_i32, %c0_i32_0, %c0_i32_1 : i32, i32, i32
  }
  func.func @transform_6(%arg0: i32) -> (i32, i32) {
    %c0_i32 = arith.constant 0 : i32
    %c0_i32_0 = arith.constant 0 : i32
    %c0_i32_1 = arith.constant 0 : i32
    return %c0_i32, %c0_i32_0 : i32, i32
  }
  func.func @transform_7(%arg0: i32) -> (i32, i32) {
    %c0_i32 = arith.constant 0 : i32
    %c0_i32_0 = arith.constant 0 : i32
    %c0_i32_1 = arith.constant 0 : i32
    return %c0_i32, %c0_i32_0 : i32, i32
  }
  func.func @transform_8(%arg0: i32) -> (i32, i32) {
    %c0_i32 = arith.constant 0 : i32
    %c0_i32_0 = arith.constant 0 : i32
    %c0_i32_1 = arith.constant 0 : i32
    return %c0_i32, %c0_i32_0 : i32, i32
  }
  func.func @transform_9(%arg0: i32) -> (i32, i32, i32) {
    %c0_i32 = arith.constant 0 : i32
    %c0_i32_0 = arith.constant 0 : i32
    %c0_i32_1 = arith.constant 0 : i32
    return %arg0, %c0_i32, %c0_i32_0 : i32, i32, i32
  }
}

</mosaic_0001>

<bundles_post_ra>
// kernel: rdb_forward.1
= control target key start
LH: loop header
LB: loop body
LE: loop exit
PB: predicated region body
PF: predicated region fallthrough
CT: control target
= control target key end

     0   :  { %s2099_s30 = smov 0   ;;  %s2661_s0 = inlined_call_operand.vmem [shape: f32[2,8,256], index: 0, kind: input, shape index: {}]   ;;  %s2662_s1 = inlined_call_operand.vmem [shape: bf16[9,8,8], index: 1, kind: input, shape index: {}]   ;;  %s2663_s2 = inlined_call_operand.vmem [shape: f32[8,1], index: 2, kind: input, shape index: {}]   ;;  %s2664_s3 = inlined_call_operand.vmem [shape: bf16[9,8,16], index: 3, kind: input, shape index: {}]   ;;  %s2665_s4 = inlined_call_operand.vmem [shape: f32[8,1], index: 4, kind: input, shape index: {}]   ;;  %s2666_s5 = inlined_call_operand.vmem [shape: bf16[9,8,24], index: 5, kind: input, shape index: {}]   ;;  %s2667_s6 = inlined_call_operand.vmem [shape: f32[8,1], index: 6, kind: input, shape index: {}]   ;;  %s2668_s7 = inlined_call_operand.vmem [shape: bf16[8,32], index: 7, kind: input, shape index: {}]   ;;  %s2669_s8 = inlined_call_operand.vmem [shape: f32[8,1], index: 8, kind: input, shape index: {}]   ;;  %s2670_s9 = inlined_call_operand.vmem [shape: f32[2,8,256], index: 9, kind: output, shape index: {}]  }
   0x1 LB: > { %s1911_s10 = sadd.s32 4294967295, %s2036_s30   ;;  %p1915_p0 = scmp.ge.s32.totalorder %s2036_s30, 1  ;;  %s2036_s30 = sphi %s2099_s30, %s19_s30  }
   0x2   : > { %p287_p1 = scmp.lt.s32.totalorder %s2036_s30, 3 }
   0x4   : > { %p288_p2 = pnand %p1915_p0, %p287_p1 }
   0x5   : > { %p323_p3 = scmp.lt.s32.totalorder (!%p288_p2), %s1911_s10, 1  ;;  %s2039_s11 = smov (!%p288_p2), 1  }
   0x6   : > { %291 = sbr.rel (%p288_p2) target bundleno = 1135 (0x46f), region = 56  ;;  %s2040_s16 = smov (!%p288_p2), 17  }
   0x7   : > { %s2041_s17 = smov (!%p288_p2), 113   ;;  %s2042_s18 = smov (!%p288_p2), 16  }
   0x8   : > { %s2043_s19 = smov (!%p288_p2), 112   ;;  %s2044_s20 = smov (!%p288_p2), 127  }
   0x9   : > { %s2045_s21 = smov (!%p288_p2), 15   ;;  %s2046_s22 = smov (!%p288_p2), 111  }
   0xb   : > { %v2038_v0 = vmov 0.0|0.0   ;;  %s2672_s10 = smov (!%p323_p3, %s1911_s10), 1  ;;  %vm461_vm0 = vcmask 138240   ;;  %vm422_vm1 = vcmask 1043456   ;;  %v403_v10 = vld [vmem:[%s2662_s1] sm:$0xf] }
   0xc   : > { %409 = vrot.lane.b32.xlu0 %v2038_v0, %s2039_s11  ;;  %s2006_s12 = sshll.u32 %s2672_s10, 4  ;;  %vm418_vm2 = vcmask 64512   ;;  %vm415_vm3 = vcmask 7168   ;;  %v1924_v18 = vld [vmem:[%s2662_s1 + $0xc] sm:$0xf]  ;;  %vm516_vm4 = vcmask 924672  }
   0xd   : > { %s2117_s15 = scalar_lea.vmem %s2661_s0, %s2006_s12  ;;  %v1933_v19 = vld [vmem:[%s2662_s1 + $0x10] sm:$0xf]  ;;  %v1929_v33 = vld [vmem:[%s2662_s1 + $0x18] sm:$0xf]  ;;  %vm601_vm5 = vcmask 130048   ;;  %v827_v34 = vld [vmem:[%s2663_s2] sm:$0xff]  ;;  %s332_s28 = scalar_lea.vmem %s2670_s9, %s2006_s12 }
   0xe   : > { %v2120_v1 = vld [vmem:[%s2117_s15 + $0x8] sm:$0xff]  ;;  %v2123_v2 = vld [vmem:[%s2117_s15] sm:$0xff]  ;;  %v2047_v37 = vmov 0   ;;  %vm647_vm6 = vcmask 916480   ;;  %v1938_v50 = vld [vmem:[%s2662_s1 + $0x1c] sm:$0xf] }
   0xf   : > { %v402_v3 = vpack.c.bf16 %v2120_v1, %v2120_v1  ;;  %v2129_v4 = vpack.c.bf16 %v2123_v2, %v2123_v2  ;;  %2027 = vset.pattern.permute.xlu0 %v2047_v37  ;;  %2028 = vset.pattern.permute.xlu2 %v2047_v37  ;;  %v1932_v49 = vld [vmem:[%s2662_s1 + $0x4] sm:$0xf]  ;;  %vm697_vm7 = vcmask 1039360   ;;  %vm741_vm8 = vcmask 121856  }
  0x10   : > { %2029 = vset.pattern.permute.xlu1 %v2047_v37  ;;  %vm787_vm9 = vcmask 908288   ;;  %vm1298_vm14 = vcmask 195584   ;;  %vm1820_vm15 = vcmask 261120  }
  0x11   : > { %413 = vrot.lane.b32.xlu1 %v402_v3, %s2039_s11  ;;  %457 = vrot.lane.b32.xlu2 %v2129_v4, %s2040_s16  ;;  %v567_v8 = vsel %vm422_vm1, %v402_v3, 0  ;;  %v564_v24 = vsel %vm422_vm1, %v2129_v4, 0 }
  0x14   : > { %411 = vrot.lane.b32.xlu0 %v2129_v4, %s2039_s11 }
  0x19   : > { %455 = vrot.lane.b32.xlu1 %v2038_v0, %s2040_s16  ;;  %459 = vrot.lane.b32.xlu2 %v402_v3, %s2040_s16 }
  0x1c   : > { %510 = vrot.lane.b32.xlu0 %v2129_v4, %s2041_s17 }
  0x21   : > { %512 = vrot.lane.b32.xlu1 %v402_v3, %s2041_s17  ;;  %514 = vrot.lane.b32.xlu2 %v2038_v0, %s2041_s17 }
  0x24   : > { %595 = vrot.lane.b32.xlu0 %v2038_v0, %s2042_s18 }
  0x29   : > { %597 = vrot.lane.b32.xlu1 %v2129_v4, %s2042_s18  ;;  %599 = vrot.lane.b32.xlu2 %v402_v3, %s2042_s18 }
  0x2c   : > { %641 = vrot.lane.b32.xlu0 %v2129_v4, %s2043_s19 }
  0x31   : > { %643 = vrot.lane.b32.xlu1 %v402_v3, %s2043_s19  ;;  %645 = vrot.lane.b32.xlu2 %v2038_v0, %s2043_s19 }
  0x34   : > { %691 = vrot.lane.b32.xlu0 %v2129_v4, %s2044_s20 }
  0x39   : > { %693 = vrot.lane.b32.xlu1 %v402_v3, %s2044_s20  ;;  %695 = vrot.lane.b32.xlu2 %v2038_v0, %s2044_s20 }
  0x3c   : > { %735 = vrot.lane.b32.xlu0 %v2038_v0, %s2045_s21 }
  0x41   : > { %737 = vrot.lane.b32.xlu1 %v2129_v4, %s2045_s21  ;;  %739 = vrot.lane.b32.xlu2 %v402_v3, %s2045_s21 }
  0x44   : > { %781 = vrot.lane.b32.xlu0 %v2129_v4, %s2046_s22  ;;  %v1941_v4 = vld [vmem:[%s2662_s1 + $0x8] sm:$0xf] }
  0x49   : > { %783 = vrot.lane.b32.xlu1 %v402_v3, %s2046_s22  ;;  %785 = vrot.lane.b32.xlu2 %v2038_v0, %s2046_s22  ;;  %v1942_v3 = vld [vmem:[%s2662_s1 + $0x14] sm:$0xf] }
  0x4c   : > { %830 = vperm.xlu0 %2027, %v827_v34  }
  0x51   : > { %862 = vrot.lane.b32.xlu1 %v2038_v0, %s2039_s11 }
  0x6b   : > { %v458_v5 = vpop.permute.xlu2 %457 }
  0x73   : > { %v460_v6 = vpop.permute.xlu2 %459 }
  0x74   : > { %v463_v7 = vsel %vm461_vm0, %v458_v5, %v460_v6 }
  0x75   : > { %v471_v9 = vsel %vm422_vm1, %v463_v7, 0 }
  0x76   : > { %493 = vmatpush.bf16.msra.mxu3 %v471_v9 }
  0x79   : > { %1928 = vmatmul.msk.bf16.vlgmr.msra.gmra.mxu3 %vm418_vm2, %v403_v10 }
  0x7a   : > { %589 = vmatpush.bf16.msrb.mxu3 %v567_v8 }
  0x7b   : > { %v515_v20 = vpop.permute.xlu2 %514 }
  0x7e   : > { %v410_v11 = vpop.permute.xlu0 %409 }
  0x83   : > { %v414_v12 = vpop.permute.xlu1 %413  ;;  %v600_v26 = vpop.permute.xlu2 %599 }
  0x86   : > { %v412_v13 = vpop.permute.xlu0 %411 }
  0x87   : > { %v416_v14 = vsel %vm415_vm3, %v410_v11, %v412_v13  ;;  %v417_v15 = vsel %vm415_vm3, %v412_v13, %v414_v12  ;;  %v1947_v12 = vld [vmem:[%s2662_s1 + $0x20] sm:$0xf] }
  0x88   : > { %v424_v16 = vsel %vm422_vm1, %v416_v14, 0  ;;  %v427_v17 = vsel %vm422_vm1, %v417_v15, 0 }
  0x89   : > { %436 = vmatpush.bf16.msra.mxu0 %v424_v16  ;;  %449 = vmatpush.bf16.msra.mxu1 %v427_v17 }
  0x8a   : > { %1935 = vmatmul.msk.bf16.vlgmr.msrb.gmra.mxu3 %vm418_vm2, %v1933_v19 }
  0x8b   : > { %v456_v21 = vpop.permute.xlu1 %455  ;;  %v646_v41 = vpop.permute.xlu2 %645 }
  0x8c   : > { %1925 = vmatmul.msk.bf16.vlgmr.msra.gmra.mxu0 %vm418_vm2, %v1924_v18  ;;  %1926 = vmatmul.msk.bf16.vlgmr.msra.gmra.mxu1 %vm418_vm2, %v1924_v18  ;;  %v462_v23 = vsel %vm461_vm0, %v456_v21, %v458_v5 }
  0x8d   : > { %v468_v25 = vsel %vm422_vm1, %v462_v23, 0 }
  0x8e   : > { %v511_v22 = vpop.permute.xlu0 %510  ;;  %480 = vmatpush.bf16.msra.mxu2 %v468_v25 }
  0x91   : > { %1927 = vmatmul.msk.bf16.vlgmr.msra.gmra.mxu2 %vm418_vm2, %v403_v10 }
  0x92   : > { %576 = vmatpush.bf16.msrb.mxu2 %v564_v24 }
  0x93   : > { %v513_v27 = vpop.permute.xlu1 %512  ;;  %v696_v51 = vpop.permute.xlu2 %695 }
  0x94   : > { %v517_v29 = vsel %vm516_vm4, %v511_v22, %v513_v27  ;;  %v518_v30 = vsel %vm516_vm4, %v513_v27, %v515_v20 }
  0x95   : > { %v523_v31 = vsel %vm422_vm1, %v517_v29, 0  ;;  %v526_v32 = vsel %vm422_vm1, %v518_v30, 0 }
  0x96   : > { %v596_v28 = vpop.permute.xlu0 %595  ;;  %535 = vmatpush.bf16.msrb.mxu0 %v523_v31  ;;  %548 = vmatpush.bf16.msrb.mxu1 %v526_v32  ;;  %v346_v31 = vlaneseq }
  0x9b   : > { %v598_v35 = vpop.permute.xlu1 %597  ;;  %v740_v58 = vpop.permute.xlu2 %739 }
  0x9c   : > { %1930 = vmatmul.msk.bf16.vlgmr.msrb.gmra.mxu0 %vm418_vm2, %v1929_v33  ;;  %1931 = vmatmul.msk.bf16.vlgmr.msrb.gmra.mxu1 %vm418_vm2, %v1929_v33  ;;  %v603_v38 = vsel %vm601_vm5, %v598_v35, %v600_v26  ;;  %v602_v39 = vsel %vm601_vm5, %v596_v28, %v598_v35  ;;  %v347_v35 = vand.u32 127, %v346_v31  ;;  %v1950_v31 = vld [vmem:[%s2664_s3 + $0xc] sm:$0xf] }
  0x9d   : > { %v611_v40 = vsel %vm422_vm1, %v603_v38, 0  ;;  %v608_v42 = vsel %vm422_vm1, %v602_v39, 0 }
  0x9e   : > { %v642_v36 = vpop.permute.xlu0 %641  ;;  %620 = vmatpush.bf16.msra.mxu0 %v608_v42  ;;  %633 = vmatpush.bf16.msra.mxu1 %v611_v40  ;;  %v348_v37 = vadd.s32 128, %v347_v35 }
  0xa0   : > { %v360_v42 = vand.u32 15, %v348_v37 }
  0xa1   : > { %1934 = vmatmul.msk.bf16.vlgmr.msrb.gmra.mxu2 %vm418_vm2, %v1933_v19 }
  0xa3   : > { %v644_v43 = vpop.permute.xlu1 %643  ;;  %v786_v5 = vpop.permute.xlu2 %785 }
  0xa4   : > { %v649_v44 = vsel %vm647_vm6, %v644_v43, %v646_v41  ;;  %v648_v45 = vsel %vm647_vm6, %v642_v36, %v644_v43  ;;  %v353_v41 = vand.u32 15, %v347_v35 }
  0xa5   : > { %v657_v46 = vsel %vm422_vm1, %v649_v44, 0  ;;  %v654_v47 = vsel %vm422_vm1, %v648_v45, 0  ;;  %v374_v45 = vadd.s32 4294967295, %v360_v42 }
  0xa6   : > { %v692_v48 = vpop.permute.xlu0 %691  ;;  %679 = vmatpush.bf16.msra.mxu3 %v657_v46  ;;  %666 = vmatpush.bf16.msra.mxu2 %v654_v47  ;;  %v373_v43 = vadd.s32 4294967295, %v353_v41 }
  0xa7   : > { %vm376_vm11 = vcmp.ge.s32.totalorder %v374_v45, 0 }
  0xa8   : > { %vm375_vm10 = vcmp.ge.s32.totalorder %v373_v43, 0 }
  0xa9   : > { %1940 = vmatmul.msk.bf16.vlgmr.msra.gmra.mxu3 %vm418_vm2, %v1938_v50 }
  0xab   : > { %v694_v52 = vpop.permute.xlu1 %693 }
  0xac   : > { %1936 = vmatmul.msk.bf16.vlgmr.msra.gmra.mxu0 %vm418_vm2, %v1932_v49  ;;  %1937 = vmatmul.msk.bf16.vlgmr.msra.gmra.mxu1 %vm418_vm2, %v1932_v49  ;;  %v699_v53 = vsel %vm697_vm7, %v694_v52, %v696_v51  ;;  %v698_v54 = vsel %vm697_vm7, %v692_v48, %v694_v52  ;;  %v385_v52 = vadd.s32 1, %v353_v41 }
  0xad   : > { %v707_v55 = vsel %vm422_vm1, %v699_v53, 0  ;;  %v704_v56 = vsel %vm422_vm1, %v698_v54, 0  ;;  %v386_v53 = vadd.s32 1, %v360_v42 }
  0xae   : > { %716 = vmatpush.bf16.msrb.mxu0 %v704_v56  ;;  %729 = vmatpush.bf16.msrb.mxu1 %v707_v55  ;;  %v736_v57 = vpop.permute.xlu0 %735  ;;  %vm389_vm12 = vcmp.le.s32.totalorder %v385_v52, 15 }
  0xaf   : > { %vm390_vm13 = vcmp.le.s32.totalorder %v386_v53, 15 }
  0xb1   : > { %1939 = vmatmul.msk.bf16.vlgmr.msra.gmra.mxu2 %vm418_vm2, %v1938_v50 }
  0xb3   : > { %v738_v59 = vpop.permute.xlu1 %737 }
  0xb4   : > { %v743_v60 = vsel %vm741_vm8, %v738_v59, %v740_v58  ;;  %v742_v61 = vsel %vm741_vm8, %v736_v57, %v738_v59 }
  0xb5   : > { %v751_v62 = vsel %vm422_vm1, %v743_v60, 0  ;;  %v748_v63 = vsel %vm422_vm1, %v742_v61, 0  ;;  %v2048_v60 = vmov 0.0  }
  0xb6   : > { %773 = vmatpush.bf16.msrb.mxu3 %v751_v62  ;;  %760 = vmatpush.bf16.msrb.mxu2 %v748_v63  ;;  %v782_v6 = vpop.permute.xlu0 %781  ;;  %v2254_v61 = vsel %vm375_vm10, 1.0, %v2048_v60  ;;  %v2256_v62 = vsel %vm376_vm11, 1.0, %v2048_v60 }
  0xb9   : > { %1946 = vmatmul.msk.bf16.vlgmr.msrb.gmra.mxu3 %vm418_vm2, %v1941_v4 }
  0xbb   : > { %v784_v7 = vpop.permute.xlu1 %783 }
  0xbc   : > { %1943 = vmatmul.msk.bf16.vlgmr.msrb.gmra.mxu0 %vm418_vm2, %v1942_v3  ;;  %1944 = vmatmul.msk.bf16.vlgmr.msrb.gmra.mxu1 %vm418_vm2, %v1942_v3  ;;  %v789_v8 = vsel %vm787_vm9, %v784_v7, %v786_v5  ;;  %v788_v9 = vsel %vm787_vm9, %v782_v6, %v784_v7 }
  0xbd   : > { %v797_v10 = vsel %vm422_vm1, %v789_v8, 0  ;;  %v794_v11 = vsel %vm422_vm1, %v788_v9, 0  ;;  %v2258_v8 = vsel %vm389_vm12, 1.0, %v2048_v60 }
  0xbe   : > { %806 = vmatpush.bf16.msra.mxu0 %v794_v11  ;;  %819 = vmatpush.bf16.msra.mxu1 %v797_v10  ;;  %v831_v57 = vpop.permute.xlu0 %830  ;;  %v2260_v10 = vsel %vm390_vm13, 1.0, %v2048_v60 }
  0xc1   : > { %1945 = vmatmul.msk.bf16.vlgmr.msrb.gmra.mxu2 %vm418_vm2, %v1941_v4 }
  0xcc   : > { %1948 = vmatmul.msk.bf16.vlgmr.msra.gmra.mxu0 %vm418_vm2, %v1947_v12  ;;  %1949 = vmatmul.msk.bf16.vlgmr.msra.gmra.mxu1 %vm418_vm2, %v1947_v12 }
  0xfc   : > { %v495_v13 = vpop.f32.mrf.mxu3 }
 0x104   : > { %v497_v14 = vpop.f32.mrf.mxu3 }
 0x109   : > { %v438_v15 = vpop.f32.mrf.mxu0  ;;  %v451_v16 = vpop.f32.mrf.mxu1 }
 0x10a   : > { %v496_v54 = vadd.f32 %v495_v13, %v451_v16 }
 0x10d   : > { %v591_v17 = vpop.f32.mrf.mxu3 }
 0x111   : > { %v440_v18 = vpop.f32.mrf.mxu0  ;;  %v453_v19 = vpop.f32.mrf.mxu1 }
 0x114   : > { %v482_v20 = vpop.f32.mrf.mxu2 }
 0x115   : > { %v593_v21 = vpop.f32.mrf.mxu3  ;;  %v483_v47 = vadd.f32 %v482_v20, %v438_v15 }
 0x119   : > { %v537_v22 = vpop.f32.mrf.mxu0  ;;  %v550_v23 = vpop.f32.mrf.mxu1 }
 0x11a   : > { %v554_v58 = vadd.f32 %v537_v22, %v483_v47  ;;  %v555_v59 = vadd.f32 %v550_v23, %v496_v54 }
 0x11c   : > { %v484_v24 = vpop.f32.mrf.mxu2  ;;  %v835_v12 = vmul.f32 %v2254_v61, %v554_v58  ;;  %v836_v13 = vmul.f32 %v2256_v62, %v555_v59 }
 0x121   : > { %v539_v25 = vpop.f32.mrf.mxu0  ;;  %v552_v26 = vpop.f32.mrf.mxu1 }
 0x124   : > { %v578_v27 = vpop.f32.mrf.mxu2 }
 0x129   : > { %v622_v28 = vpop.f32.mrf.mxu0  ;;  %v635_v29 = vpop.f32.mrf.mxu1 }
 0x12a   : > { %v623_v50 = vadd.f32 %v622_v28, %v578_v27  ;;  %v636_v51 = vadd.f32 %v635_v29, %v591_v17 }
 0x12c   : > { %v580_v30 = vpop.f32.mrf.mxu2  ;;  %v681_v32 = vpop.f32.mrf.mxu3 }
 0x12d   : > { %v686_v55 = vadd.f32 %v681_v32, %v636_v51 }
 0x12f   : > { %v834_v3 = vadd.f32 %v831_v57, %v686_v55  ;;  %v1959_v55 = vld [vmem:[%s2664_s3 + $0x10] sm:$0xf] }
 0x131   : > { %v624_v33 = vpop.f32.mrf.mxu0  ;;  %v637_v34 = vpop.f32.mrf.mxu1  ;;  %v838_v16 = vadd.f32 %v836_v13, %v834_v3 }
 0x134   : > { %v668_v36 = vpop.f32.mrf.mxu2  ;;  %v683_v38 = vpop.f32.mrf.mxu3 }
 0x135   : > { %v685_v56 = vadd.f32 %v668_v36, %v623_v50  ;;  %v1955_v38 = vld [vmem:[%s2664_s3 + $0x18] sm:$0xf]  ;;  %v1958_v50 = vld [vmem:[%s2664_s3 + $0x4] sm:$0xf] }
 0x137   : > { %v833_v4 = vadd.f32 %v831_v57, %v685_v56 }
 0x139   : > { %v718_v39 = vpop.f32.mrf.mxu0  ;;  %v731_v40 = vpop.f32.mrf.mxu1  ;;  %v837_v17 = vadd.f32 %v835_v12, %v833_v4 }
 0x13c   : > { %v670_v44 = vpop.f32.mrf.mxu2  ;;  %v775_v46 = vpop.f32.mrf.mxu3 }
 0x13d   : > { %v776_v5 = vadd.f32 %v775_v46, %v731_v40  ;;  %v856_v44 = vld [vmem:[%s2664_s3] sm:$0xf] }
 0x141   : > { %v720_v48 = vpop.f32.mrf.mxu0  ;;  %v733_v49 = vpop.f32.mrf.mxu1 }
 0x144   : > { %v762_v63 = vpop.f32.mrf.mxu2  ;;  %v777_v7 = vpop.f32.mrf.mxu3 }
 0x145   : > { %v763_v6 = vadd.f32 %v762_v63, %v718_v39  ;;  %v1968_v63 = vld [vmem:[%s2664_s3 + $0x14] sm:$0xf] }
 0x149   : > { %v808_v9 = vpop.f32.mrf.mxu0  ;;  %v821_v11 = vpop.f32.mrf.mxu1 }
 0x14a   : > { %v825_v14 = vadd.f32 %v808_v9, %v763_v6  ;;  %v826_v15 = vadd.f32 %v821_v11, %v776_v5  ;;  %v1964_v9 = vld [vmem:[%s2664_s3 + $0x1c] sm:$0xf] }
 0x14c   : > { %v839_v18 = vmul.f32 %v2258_v8, %v825_v14  ;;  %v840_v19 = vmul.f32 %v2260_v10, %v826_v15  ;;  %v764_v22 = vpop.f32.mrf.mxu2 }
 0x14e   : > { %v841_v20 = vadd.f32 %v839_v18, %v837_v17  ;;  %v842_v21 = vadd.f32 %v840_v19, %v838_v16  ;;  %v1973_v16 = vld [vmem:[%s2664_s3 + $0x20] sm:$0xf]  ;;  %v1967_v19 = vld [vmem:[%s2664_s3 + $0x8] sm:$0xf] }
 0x150   : > { %v843_v23 = vmax.f32 %v841_v20, 0.0  ;;  %v844_v24 = vmax.f32 %v842_v21, 0.0 }
 0x151   : > { %v810_v25 = vpop.f32.mrf.mxu0  ;;  %v823_v26 = vpop.f32.mrf.mxu1 }
 0x152   : > { %v2267_v27 = vpack.c.bf16 %v843_v23, %v2123_v2  ;;  %v2270_v28 = vpack.c.bf16 %v844_v24, %v2120_v1  ;;  %v1236_v1 = vld [vmem:[%s2665_s4] sm:$0xff]  ;;  %v863_v2 = vpop.permute.xlu1 %862 }
 0x154   : > { %957 = vrot.lane.b32.xlu0 %v2270_v28, %s2041_s17  ;;  %866 = vrot.lane.b32.xlu1 %v2270_v28, %s2039_s11 }
 0x155   : > { %864 = vrot.lane.b32.xlu2 %v2267_v27, %s2039_s11 }
 0x15c   : > { %959 = vrot.lane.b32.xlu1 %v2038_v0, %s2041_s17  ;;  %904 = vrot.lane.b32.xlu0 %v2267_v27, %s2040_s16 }
 0x15d   : > { %955 = vrot.lane.b32.xlu2 %v2267_v27, %s2041_s17 }
 0x164   : > { %906 = vrot.lane.b32.xlu1 %v2270_v28, %s2040_s16  ;;  %1031 = vrot.lane.b32.xlu0 %v2267_v27, %s2042_s18 }
 0x165   : > { %902 = vrot.lane.b32.xlu2 %v2038_v0, %s2040_s16 }
 0x16c   : > { %1033 = vrot.lane.b32.xlu1 %v2270_v28, %s2042_s18  ;;  %1117 = vrot.lane.b32.xlu0 %v2270_v28, %s2044_s20 }
 0x16d   : > { %1029 = vrot.lane.b32.xlu2 %v2038_v0, %s2042_s18 }
 0x174   : > { %1119 = vrot.lane.b32.xlu1 %v2038_v0, %s2044_s20  ;;  %1072 = vrot.lane.b32.xlu0 %v2270_v28, %s2043_s19 }
 0x175   : > { %1115 = vrot.lane.b32.xlu2 %v2267_v27, %s2044_s20 }
 0x17c   : > { %1074 = vrot.lane.b32.xlu1 %v2038_v0, %s2043_s19  ;;  %1197 = vrot.lane.b32.xlu0 %v2270_v28, %s2046_s22 }
 0x17d   : > { %1070 = vrot.lane.b32.xlu2 %v2267_v27, %s2043_s19 }
 0x184   : > { %1199 = vrot.lane.b32.xlu1 %v2038_v0, %s2046_s22  ;;  %1156 = vrot.lane.b32.xlu0 %v2267_v27, %s2045_s21 }
 0x185   : > { %1195 = vrot.lane.b32.xlu2 %v2267_v27, %s2046_s22 }
 0x18c   : > { %1158 = vrot.lane.b32.xlu1 %v2270_v28, %s2045_s21  ;;  %1286 = vrot.lane.b32.xlu0 %v2038_v0, %s2039_s11 }
 0x18d   : > { %1154 = vrot.lane.b32.xlu2 %v2038_v0, %s2045_s21 }
 0x194   : > { %1282 = vrot.lane.b32.xlu1 %v2267_v27, %s2039_s11  ;;  %1280 = vrot.lane.b32.xlu0 %v2038_v0, %s2039_s11 }
 0x195   : > { %1239 = vperm.xlu2 %2028, %v1236_v1  }
 0x19c   : > { %1336 = vrot.lane.b32.xlu1 %v2267_v27, %s2040_s16  ;;  %1340 = vrot.lane.b32.xlu0 %v2038_v0, %s2040_s16 }
 0x19d   : > { %1420 = vrot.lane.b32.xlu2 %v2038_v0, %s2041_s17 }
 0x1a4   : > { %1412 = vrot.lane.b32.xlu1 %v2270_v28, %s2041_s17  ;;  %1334 = vrot.lane.b32.xlu0 %v2038_v0, %s2040_s16 }
 0x1a5   : > { %1414 = vrot.lane.b32.xlu2 %v2038_v0, %s2041_s17 }
 0x1ac   : > { %1506 = vrot.lane.b32.xlu1 %v2267_v27, %s2042_s18  ;;  %1510 = vrot.lane.b32.xlu0 %v2038_v0, %s2042_s18 }
 0x1ad   : > { %1569 = vrot.lane.b32.xlu2 %v2038_v0, %s2043_s19 }
 0x1af   : > { %v865_v29 = vpop.permute.xlu2 %864 }
 0x1b0   : > { %v868_v30 = vsel %vm415_vm3, %v863_v2, %v865_v29 }
 0x1b1   : > { %883 = vmatpush.bf16.msra.mxu2 %v868_v30 }
 0x1b4   : > { %1561 = vrot.lane.b32.xlu1 %v2270_v28, %s2043_s19  ;;  %1504 = vrot.lane.b32.xlu0 %v2038_v0, %s2042_s18 }
 0x1b5   : > { %1284 = vrot.lane.b32.xlu2 %v2270_v28, %s2039_s11  ;;  %1951 = vmatmul.msk.bf16.vlgmr.msra.gmra.mxu2 %vm601_vm5, %v1950_v31 }
 0x1b7   : > { %v956_v32 = vpop.permute.xlu2 %955 }
 0x1bc   : > { %1410 = vrot.lane.b32.xlu0 %v2267_v27, %s2041_s17 }
 0x1bd   : > { %1338 = vrot.lane.b32.xlu2 %v2270_v28, %s2040_s16 }
 0x1bf   : > { %v903_v33 = vpop.permute.xlu2 %902 }
 0x1c4   : > { %1559 = vrot.lane.b32.xlu0 %v2267_v27, %s2043_s19 }
 0x1c5   : > { %1508 = vrot.lane.b32.xlu2 %v2270_v28, %s2042_s18 }
 0x1c6   : > { %v958_v34 = vpop.permute.xlu0 %957  ;;  %v867_v35 = vpop.permute.xlu1 %866 }
 0x1c7   : > { %v961_v36 = vsel %vm516_vm4, %v956_v32, %v958_v34  ;;  %v869_v37 = vsel %vm415_vm3, %v865_v29, %v867_v35  ;;  %v1030_v39 = vpop.permute.xlu2 %1029 }
 0x1c8   : > { %896 = vmatpush.bf16.msra.mxu3 %v869_v37  ;;  %975 = vmatpush.bf16.msrb.mxu2 %v961_v36 }
 0x1cb   : > { %1952 = vmatmul.msk.bf16.vlgmr.msra.gmra.mxu3 %vm601_vm5, %v1950_v31  ;;  %1956 = vmatmul.msk.bf16.vlgmr.msrb.gmra.mxu2 %vm601_vm5, %v1955_v38 }
 0x1ce   : > { %v960_v40 = vpop.permute.xlu1 %959  ;;  %v905_v41 = vpop.permute.xlu0 %904 }
 0x1cf   : > { %v962_v42 = vsel %vm516_vm4, %v958_v34, %v960_v40  ;;  %v908_v43 = vsel %vm461_vm0, %v903_v33, %v905_v41  ;;  %v1116_v47 = vpop.permute.xlu2 %1115 }
 0x1d0   : > { %922 = vmatpush.bf16.msrb.mxu0 %v908_v43  ;;  %988 = vmatpush.bf16.msrb.mxu3 %v962_v42 }
 0x1d3   : > { %1953 = vmatmul.msk.bf16.vlgmr.msrb.gmra.mxu0 %vm601_vm5, %v856_v44 }
 0x1d4   : > { %1010 = vmatpush.bf16.msra.mxu0 %v2267_v27 }
 0x1d6   : > { %v907_v45 = vpop.permute.xlu1 %906  ;;  %v1032_v46 = vpop.permute.xlu0 %1031 }
 0x1d7   : > { %v909_v48 = vsel %vm461_vm0, %v905_v41, %v907_v45  ;;  %v1035_v49 = vsel %vm601_vm5, %v1030_v39, %v1032_v46  ;;  %v1071_v56 = vpop.permute.xlu2 %1070 }
 0x1d8   : > { %935 = vmatpush.bf16.msrb.mxu1 %v909_v48  ;;  %1049 = vmatpush.bf16.msra.mxu2 %v1035_v49 }
 0x1db   : > { %1954 = vmatmul.msk.bf16.vlgmr.msrb.gmra.mxu1 %vm601_vm5, %v856_v44  ;;  %1957 = vmatmul.msk.bf16.vlgmr.msrb.gmra.mxu3 %vm601_vm5, %v1955_v38 }
 0x1dc   : > { %1023 = vmatpush.bf16.msra.mxu1 %v2270_v28  ;;  %1962 = vmatmul.msk.bf16.vlgmr.msra.gmra.mxu2 %vm601_vm5, %v1958_v50 }
 0x1de   : > { %v1034_v51 = vpop.permute.xlu1 %1033  ;;  %v1118_v52 = vpop.permute.xlu0 %1117 }
 0x1df   : > { %v1036_v53 = vsel %vm601_vm5, %v1032_v46, %v1034_v51  ;;  %v1121_v54 = vsel %vm697_vm7, %v1116_v47, %v1118_v52  ;;  %v1196_v3 = vpop.permute.xlu2 %1195 }
 0x1e0   : > { %1062 = vmatpush.bf16.msra.mxu3 %v1036_v53  ;;  %1135 = vmatpush.bf16.msrb.mxu2 %v1121_v54 }
 0x1e3   : > { %1960 = vmatmul.msk.bf16.vlgmr.msra.gmra.mxu0 %vm601_vm5, %v1959_v55 }
 0x1e6   : > { %v1120_v57 = vpop.permute.xlu1 %1119  ;;  %v1073_v58 = vpop.permute.xlu0 %1072 }
 0x1e7   : > { %v1122_v59 = vsel %vm697_vm7, %v1118_v52, %v1120_v57  ;;  %v1076_v60 = vsel %vm647_vm6, %v1071_v56, %v1073_v58  ;;  %v1155_v11 = vpop.permute.xlu2 %1154 }
 0x1e8   : > { %1090 = vmatpush.bf16.msrb.mxu0 %v1076_v60  ;;  %1148 = vmatpush.bf16.msrb.mxu3 %v1122_v59 }
 0x1eb   : > { %1961 = vmatmul.msk.bf16.vlgmr.msra.gmra.mxu1 %vm601_vm5, %v1959_v55  ;;  %1963 = vmatmul.msk.bf16.vlgmr.msra.gmra.mxu3 %vm601_vm5, %v1958_v50 }
 0x1ec   : > { %1969 = vmatmul.msk.bf16.vlgmr.msrb.gmra.mxu2 %vm601_vm5, %v1968_v63 }
 0x1ee   : > { %v1075_v4 = vpop.permute.xlu1 %1074  ;;  %v1198_v5 = vpop.permute.xlu0 %1197 }
 0x1ef   : > { %v1077_v6 = vsel %vm647_vm6, %v1073_v58, %v1075_v4  ;;  %v1201_v7 = vsel %vm787_vm9, %v1196_v3, %v1198_v5  ;;  %v1240_v49 = vpop.permute.xlu2 %1239 }
 0x1f0   : > { %1103 = vmatpush.bf16.msrb.mxu1 %v1077_v6  ;;  %1215 = vmatpush.bf16.msra.mxu2 %v1201_v7 }
 0x1f3   : > { %1965 = vmatmul.msk.bf16.vlgmr.msrb.gmra.mxu0 %vm601_vm5, %v1964_v9 }
 0x1f6   : > { %v1200_v12 = vpop.permute.xlu1 %1199  ;;  %v1157_v13 = vpop.permute.xlu0 %1156 }
 0x1f7   : > { %v1202_v14 = vsel %vm787_vm9, %v1198_v5, %v1200_v12  ;;  %v1160_v15 = vsel %vm741_vm8, %v1155_v11, %v1157_v13 }
 0x1f8   : > { %1174 = vmatpush.bf16.msra.mxu0 %v1160_v15  ;;  %1228 = vmatpush.bf16.msra.mxu3 %v1202_v14 }
 0x1fb   : > { %1966 = vmatmul.msk.bf16.vlgmr.msrb.gmra.mxu1 %vm601_vm5, %v1964_v9  ;;  %1970 = vmatmul.msk.bf16.vlgmr.msrb.gmra.mxu3 %vm601_vm5, %v1968_v63 }
 0x1fc   : > { %1974 = vmatmul.msk.bf16.vlgmr.msra.gmra.mxu2 %vm601_vm5, %v1973_v16 }
 0x1fe   : > { %v1159_v17 = vpop.permute.xlu1 %1158 }
 0x1ff   : > { %v1161_v18 = vsel %vm741_vm8, %v1157_v13, %v1159_v17 }
 0x200   : > { %1187 = vmatpush.bf16.msra.mxu1 %v1161_v18 }
 0x203   : > { %1971 = vmatmul.msk.bf16.vlgmr.msra.gmra.mxu0 %vm601_vm5, %v1967_v19 }
 0x20b   : > { %1975 = vmatmul.msk.bf16.vlgmr.msra.gmra.mxu3 %vm601_vm5, %v1973_v16  ;;  %1972 = vmatmul.msk.bf16.vlgmr.msra.gmra.mxu1 %vm601_vm5, %v1967_v19 }
 0x238   : > { %v885_v20 = vpop.f32.mrf.mxu2 }
 0x240   : > { %v887_v21 = vpop.f32.mrf.mxu2 }
 0x24e   : > { %v898_v22 = vpop.f32.mrf.mxu3  ;;  %v977_v23 = vpop.f32.mrf.mxu2 }
 0x250   : > { %v924_v24 = vpop.f32.mrf.mxu0 }
 0x251   : > { %v925_v45 = vadd.f32 %v924_v24, %v885_v20 }
 0x253   : > { %v994_v50 = vadd.f32 %v977_v23, %v925_v45 }
 0x255   : > { %v1244_v56 = vmul.f32 %v2254_v61, %v994_v50 }
 0x256   : > { %v900_v25 = vpop.f32.mrf.mxu3  ;;  %v979_v26 = vpop.f32.mrf.mxu2 }
 0x257   : > { %v1287_v26 = vpop.permute.xlu0 %1286 }
 0x258   : > { %v926_v1 = vpop.f32.mrf.mxu0  ;;  %v937_v2 = vpop.f32.mrf.mxu1 }
 0x259   : > { %v938_v7 = vadd.f32 %v937_v2, %v898_v22  ;;  %v2472_v1 = vpop.permute.xlu2 %1420 }
 0x25e   : > { %v990_v29 = vpop.f32.mrf.mxu3 }
 0x25f   : > { %v1051_v30 = vpop.f32.mrf.mxu2  ;;  %v995_v12 = vadd.f32 %v990_v29, %v938_v7  ;;  %v1281_v2 = vpop.permute.xlu0 %1280  ;;  %v1271_v7 = vld [vmem:[%s2666_s5] sm:$0xf] }
 0x260   : > { %v939_v31 = vpop.f32.mrf.mxu1  ;;  %v1012_v32 = vpop.f32.mrf.mxu0 }
 0x261   : > { %v1052_v46 = vadd.f32 %v1051_v30, %v1012_v32  ;;  %v1245_v17 = vmul.f32 %v2256_v62, %v995_v12  ;;  %v2480_v29 = vpop.permute.xlu2 %1414  ;;  %v1781_v30 = vld [vmem:[%s2667_s6] sm:$0xff]  ;;  %v1283_v32 = vpop.permute.xlu1 %1282 }
 0x266   : > { %v992_v33 = vpop.f32.mrf.mxu3 }
 0x267   : > { %v1053_v34 = vpop.f32.mrf.mxu2  ;;  %v1341_v31 = vpop.permute.xlu0 %1340 }
 0x268   : > { %v1014_v35 = vpop.f32.mrf.mxu0  ;;  %v1025_v36 = vpop.f32.mrf.mxu1 }
 0x269   : > { %v2493_v33 = vpop.permute.xlu2 %1569  ;;  %v1337_v35 = vpop.permute.xlu1 %1336 }
 0x26e   : > { %v1064_v37 = vpop.f32.mrf.mxu3 }
 0x26f   : > { %v1137_v38 = vpop.f32.mrf.mxu2  ;;  %v1065_v58 = vadd.f32 %v1064_v37, %v1025_v36  ;;  %v1335_v34 = vpop.permute.xlu0 %1334 }
 0x270   : > { %v1027_v39 = vpop.f32.mrf.mxu1  ;;  %v1092_v40 = vpop.f32.mrf.mxu0 }
 0x271   : > { %v1109_v47 = vadd.f32 %v1092_v40, %v1052_v46  ;;  %v1285_v36 = vpop.permute.xlu2 %1284 }
 0x273   : > { %v1242_v54 = vadd.f32 %v1240_v49, %v1109_v47 }
 0x275   : > { %v1246_v59 = vadd.f32 %v1244_v56, %v1242_v54  ;;  %v1976_v54 = vld [vmem:[%s2666_s5 + $0xc] sm:$0xf] }
 0x276   : > { %v1066_v41 = vpop.f32.mrf.mxu3 }
 0x277   : > { %v1139_v42 = vpop.f32.mrf.mxu2  ;;  %v2505_v37 = vpop.permute.xlu0 %1510 }
 0x278   : > { %v1094_v43 = vpop.f32.mrf.mxu0  ;;  %v1105_v44 = vpop.f32.mrf.mxu1 }
 0x279   : > { %v1110_v9 = vadd.f32 %v1105_v44, %v1065_v58  ;;  %v1339_v39 = vpop.permute.xlu2 %1338 }
 0x27b   : > { %v1243_v14 = vadd.f32 %v1240_v49, %v1110_v9 }
 0x27d   : > { %v1247_v20 = vadd.f32 %v1245_v17, %v1243_v14 }
 0x27e   : > { %v1150_v48 = vpop.f32.mrf.mxu3 }
 0x27f   : > { %v1217_v51 = vpop.f32.mrf.mxu2  ;;  %v2507_v40 = vpop.permute.xlu0 %1504 }
 0x280   : > { %v1176_v52 = vpop.f32.mrf.mxu0  ;;  %v1107_v53 = vpop.f32.mrf.mxu1 }
 0x281   : > { %v1177_v55 = vadd.f32 %v1176_v52, %v1137_v38  ;;  %v1413_v38 = vpop.permute.xlu1 %1412  ;;  %v2511_v42 = vpop.permute.xlu2 %1508  ;;  %v1292_v52 = vsel %vm415_vm3, %v1281_v2, %v1283_v32  ;;  %v1293_v53 = vsel %vm415_vm3, %v1283_v32, %v1285_v36 }
 0x283   : > { %v1234_v57 = vadd.f32 %v1217_v51, %v1177_v55 }
 0x285   : > { %v1248_v60 = vmul.f32 %v2258_v8, %v1234_v57 }
 0x286   : > { %v1152_v63 = vpop.f32.mrf.mxu3 }
 0x287   : > { %v1250_v3 = vadd.f32 %v1248_v60, %v1246_v59  ;;  %v1219_v4 = vpop.f32.mrf.mxu2  ;;  %v1411_v44 = vpop.permute.xlu0 %1410 }
 0x288   : > { %v1178_v5 = vpop.f32.mrf.mxu0  ;;  %v1189_v6 = vpop.f32.mrf.mxu1  ;;  %v1347_v4 = vsel %vm461_vm0, %v1337_v35, %v1339_v39 }
 0x289   : > { %v2424_v11 = vmax.f32 %v1250_v3, 0.0  ;;  %v1190_v15 = vadd.f32 %v1189_v6, %v1150_v48  ;;  %v2509_v41 = vpop.permute.xlu1 %1506  ;;  %v1346_v3 = vsel %vm461_vm0, %v1335_v34, %v1337_v35 }
 0x28a   : > { %v1516_v32 = vsel %vm601_vm5, %v2507_v40, %v2509_v41  ;;  %v1517_v34 = vsel %vm601_vm5, %v2509_v41, %v2511_v42 }
 0x28b   : > { %v2428_v13 = vpack.c.bf16 %v2424_v11, %v2424_v11 }
 0x28d   : > { %1416 = vrot.lane.b32.xlu0 %v2428_v13, %s2041_s17  ;;  %1288 = vrot.lane.b32.xlu1 %v2428_v13, %s2039_s11  ;;  %v1473_v5 = vsel %vm422_vm1, %v2428_v13, 0 }
 0x28e   : > { %v1230_v16 = vpop.f32.mrf.mxu3 }
 0x28f   : > { %v1235_v18 = vadd.f32 %v1230_v16, %v1190_v15  ;;  %v2515_v48 = vpop.permute.xlu0 %1559 }
 0x290   : > { %v1191_v19 = vpop.f32.mrf.mxu1 }
 0x291   : > { %v1249_v21 = vmul.f32 %v2260_v10, %v1235_v18  ;;  %v2513_v45 = vpop.permute.xlu1 %1561 }
 0x292   : > { %v1571_v40 = vsel %vm647_vm6, %v2515_v48, %v2513_v45 }
 0x293   : > { %v1251_v22 = vadd.f32 %v1249_v21, %v1247_v20  ;;  %v1422_v21 = vsel %vm516_vm4, %v1411_v44, %v1413_v38  ;;  %v1990_v44 = vld [vmem:[%s2666_s5 + $0x1c] sm:$0xf] }
 0x295   : > { %v2436_v23 = vmax.f32 %v1251_v22, 0.0  ;;  %1618 = vrot.lane.b32.xlu0 %v2267_v27, %s2044_s20  ;;  %1342 = vrot.lane.b32.xlu1 %v2428_v13, %s2040_s16  ;;  %v1423_v22 = vsel %vm516_vm4, %v1413_v38, %v2480_v29 }
 0x296   : > { %v1232_v24 = vpop.f32.mrf.mxu3 }
 0x297   : > { %v2444_v25 = vpack.c.bf16 %v2436_v23, %v2436_v23  ;;  %v1981_v24 = vld [vmem:[%s2666_s5 + $0x18] sm:$0xf] }
 0x299   : > { %1290 = vrot.lane.b32.xlu2 %v2444_v25, %s2039_s11  ;;  %v1476_v6 = vsel %vm422_vm1, %v2444_v25, 0 }
 0x29d   : > { %1677 = vrot.lane.b32.xlu0 %v2038_v0, %s2045_s21  ;;  %1620 = vrot.lane.b32.xlu1 %v2270_v28, %s2044_s20 }
 0x2a1   : > { %1344 = vrot.lane.b32.xlu2 %v2444_v25, %s2040_s16 }
 0x2a5   : > { %1565 = vrot.lane.b32.xlu0 %v2428_v13, %s2043_s19  ;;  %1418 = vrot.lane.b32.xlu1 %v2444_v25, %s2041_s17 }
 0x2a9   : > { %1563 = vrot.lane.b32.xlu2 %v2038_v0, %s2043_s19 }
 0x2ad   : > { %1624 = vrot.lane.b32.xlu0 %v2428_v13, %s2044_s20  ;;  %1512 = vrot.lane.b32.xlu1 %v2428_v13, %s2042_s18 }
 0x2b1   : > { %1628 = vrot.lane.b32.xlu2 %v2038_v0, %s2044_s20 }
 0x2b5   : > { %1671 = vrot.lane.b32.xlu0 %v2038_v0, %s2045_s21  ;;  %1567 = vrot.lane.b32.xlu1 %v2444_v25, %s2043_s19 }
 0x2b9   : > { %1514 = vrot.lane.b32.xlu2 %v2444_v25, %s2042_s18 }
 0x2bd   : > { %1732 = vrot.lane.b32.xlu0 %v2428_v13, %s2046_s22  ;;  %1673 = vrot.lane.b32.xlu1 %v2267_v27, %s2045_s21 }
 0x2c1   : > { %1622 = vrot.lane.b32.xlu2 %v2038_v0, %s2044_s20 }
 0x2c5   : > { %1726 = vrot.lane.b32.xlu0 %v2267_v27, %s2046_s22  ;;  %1626 = vrot.lane.b32.xlu1 %v2444_v25, %s2044_s20 }
 0x2c9   : > { %1675 = vrot.lane.b32.xlu2 %v2270_v28, %s2045_s21 }
 0x2cd   : > { %1784 = vperm.xlu0 %2027, %v1781_v30   ;;  %1679 = vrot.lane.b32.xlu1 %v2428_v13, %s2045_s21 }
 0x2d1   : > { %1681 = vrot.lane.b32.xlu2 %v2444_v25, %s2045_s21 }
 0x2d5   : > { %1734 = vrot.lane.b32.xlu1 %v2444_v25, %s2046_s22 }
 0x2d9   : > { %1736 = vrot.lane.b32.xlu2 %v2038_v0, %s2046_s22 }
 0x2dd   : > { %1728 = vrot.lane.b32.xlu1 %v2270_v28, %s2046_s22 }
 0x2e1   : > { %1730 = vrot.lane.b32.xlu2 %v2038_v0, %s2046_s22 }
 0x2f3   : > { %v1291_v43 = vpop.permute.xlu2 %1290 }
 0x2fb   : > { %v1345_v46 = vpop.permute.xlu2 %1344 }
 0x2ff   : > { %v1289_v47 = vpop.permute.xlu1 %1288  ;;  %v1417_v56 = vpop.permute.xlu0 %1416 }
 0x300   : > { %v1294_v0 = vsel %vm415_vm3, %v1287_v26, %v1289_v47  ;;  %v1295_v49 = vsel %vm415_vm3, %v1289_v47, %v1291_v43  ;;  %v1985_v26 = vld [vmem:[%s2666_s5 + $0x10] sm:$0xf] }
 0x301   : > { %v1303_v50 = vsel %vm422_vm1, %v1294_v0, 0  ;;  %v1306_v51 = vsel %vm422_vm1, %v1295_v49, 0 }
 0x302   : > { %1314 = vmatpush.bf16.msrb.mxu0 %v1303_v50  ;;  %1327 = vmatpush.bf16.msrb.mxu1 %v1306_v51 }
 0x303   : > { %v2528_v59 = vpop.permute.xlu2 %1563 }
 0x304   : > { %v1572_v41 = vsel %vm647_vm6, %v2513_v45, %v2528_v59 }
 0x306   : > { %1315 = vmatpush.bf16.msrb.mxu0 %v1292_v52  ;;  %1328 = vmatpush.bf16.msrb.mxu1 %v1293_v53 }
 0x307   : > { %v1343_v55 = vpop.permute.xlu1 %1342  ;;  %v2547_v12 = vpop.permute.xlu0 %1618 }
 0x308   : > { %v1348_v57 = vsel %vm461_vm0, %v1341_v31, %v1343_v55  ;;  %v1349_v58 = vsel %vm461_vm0, %v1343_v55, %v1345_v46  ;;  %v1994_v55 = vld [vmem:[%s2666_s5 + $0x14] sm:$0xf] }
 0x309   : > { %v1356_v60 = vsel %vm422_vm1, %v1348_v57, 0  ;;  %v1359_v63 = vsel %vm422_vm1, %v1349_v58, 0  ;;  %1977 = vmatmul.msk.bf16.vlgmr.msrb.gmra.mxu0 %vm1298_vm14, %v1976_v54  ;;  %1978 = vmatmul.msk.bf16.vlgmr.msrb.gmra.mxu1 %vm1298_vm14, %v1976_v54 }
 0x30a   : > { %1367 = vmatpush.bf16.msrb.mxu2 %v1356_v60  ;;  %1380 = vmatpush.bf16.msrb.mxu3 %v1359_v63 }
 0x30b   : > { %v1629_v14 = vpop.permute.xlu2 %1628 }
 0x30e   : > { %1368 = vmatpush.bf16.msrb.mxu2 %v1346_v3  ;;  %1381 = vmatpush.bf16.msrb.mxu3 %v1347_v4 }
 0x30f   : > { %v2543_v9 = vpop.permute.xlu1 %1620  ;;  %v1678_v19 = vpop.permute.xlu0 %1677 }
 0x310   : > { %v1630_v53 = vsel %vm697_vm7, %v2547_v12, %v2543_v9 }
 0x311   : > { %1979 = vmatmul.msk.bf16.vlgmr.msrb.gmra.mxu2 %vm1298_vm14, %v1271_v7  ;;  %1980 = vmatmul.msk.bf16.vlgmr.msrb.gmra.mxu3 %vm1298_vm14, %v1271_v7 }
 0x312   : > { %1484 = vmatpush.bf16.msra.mxu2 %v1473_v5  ;;  %1497 = vmatpush.bf16.msra.mxu3 %v1476_v6  ;;  %v1993_v6 = vld [vmem:[%s2666_s5 + $0x8] sm:$0xf] }
 0x313   : > { %v1515_v20 = vpop.permute.xlu2 %1514 }
 0x316   : > { %1485 = vmatpush.bf16.msra.mxu2 %v2267_v27  ;;  %1498 = vmatpush.bf16.msra.mxu3 %v2270_v28 }
 0x317   : > { %v1419_v13 = vpop.permute.xlu1 %1418  ;;  %v1566_v31 = vpop.permute.xlu0 %1565 }
 0x318   : > { %v1424_v15 = vsel %vm516_vm4, %v1417_v56, %v1419_v13  ;;  %v1425_v16 = vsel %vm516_vm4, %v1419_v13, %v2472_v1 }
 0x319   : > { %v1432_v17 = vsel %vm422_vm1, %v1424_v15, 0  ;;  %v1435_v18 = vsel %vm422_vm1, %v1425_v16, 0 }
 0x31a   : > { %1443 = vmatpush.bf16.msra.mxu0 %v1432_v17  ;;  %1456 = vmatpush.bf16.msra.mxu1 %v1435_v18 }
 0x31b   : > { %v1623_v35 = vpop.permute.xlu2 %1622 }
 0x31c   : > { %v1631_v54 = vsel %vm697_vm7, %v2543_v9, %v1623_v35 }
 0x31e   : > { %1444 = vmatpush.bf16.msra.mxu0 %v1422_v21  ;;  %1457 = vmatpush.bf16.msra.mxu1 %v1423_v22 }
 0x31f   : > { %v1513_v25 = vpop.permute.xlu1 %1512  ;;  %v1625_v46 = vpop.permute.xlu0 %1624 }
 0x320   : > { %v1518_v1 = vsel %vm601_vm5, %v2505_v37, %v1513_v25  ;;  %v1519_v2 = vsel %vm601_vm5, %v1513_v25, %v1515_v20  ;;  %v1999_v20 = vld [vmem:[%s2666_s5 + $0x20] sm:$0xf] }
 0x321   : > { %v1526_v30 = vsel %vm422_vm1, %v1518_v1, 0  ;;  %v1529_v29 = vsel %vm422_vm1, %v1519_v2, 0  ;;  %1982 = vmatmul.msk.bf16.vlgmr.msra.gmra.mxu0 %vm1298_vm14, %v1981_v24  ;;  %1983 = vmatmul.msk.bf16.vlgmr.msra.gmra.mxu1 %vm1298_vm14, %v1981_v24 }
 0x322   : > { %1986 = vmatmul.msk.bf16.vlgmr.msra.gmra.mxu2 %vm1298_vm14, %v1985_v26  ;;  %1987 = vmatmul.msk.bf16.vlgmr.msra.gmra.mxu3 %vm1298_vm14, %v1985_v26 }
 0x323   : > { %1537 = vmatpush.bf16.msrb.mxu0 %v1526_v30  ;;  %1550 = vmatpush.bf16.msrb.mxu1 %v1529_v29  ;;  %v1676_v47 = vpop.permute.xlu2 %1675 }
 0x327   : > { %1538 = vmatpush.bf16.msrb.mxu0 %v1516_v32  ;;  %1551 = vmatpush.bf16.msrb.mxu1 %v1517_v34  ;;  %v1568_v36 = vpop.permute.xlu1 %1567  ;;  %v1672_v51 = vpop.permute.xlu0 %1671 }
 0x328   : > { %v1573_v37 = vsel %vm647_vm6, %v1566_v31, %v1568_v36  ;;  %v1574_v38 = vsel %vm647_vm6, %v1568_v36, %v2493_v33  ;;  %v1984_v33 = vld [vmem:[%s2666_s5 + $0x4] sm:$0xf] }
 0x329   : > { %v1581_v39 = vsel %vm422_vm1, %v1573_v37, 0  ;;  %v1584_v43 = vsel %vm422_vm1, %v1574_v38, 0 }
 0x32a   : > { %1592 = vmatpush.bf16.msrb.mxu2 %v1581_v39  ;;  %1605 = vmatpush.bf16.msrb.mxu3 %v1584_v43 }
 0x32b   : > { %v1682_v52 = vpop.permute.xlu2 %1681 }
 0x32e   : > { %1593 = vmatpush.bf16.msrb.mxu2 %v1571_v40  ;;  %1606 = vmatpush.bf16.msrb.mxu3 %v1572_v41 }
 0x32f   : > { %v1674_v42 = vpop.permute.xlu1 %1673  ;;  %v1733_v3 = vpop.permute.xlu0 %1732 }
 0x330   : > { %v1683_v4 = vsel %vm741_vm8, %v1672_v51, %v1674_v42  ;;  %v1684_v5 = vsel %vm741_vm8, %v1674_v42, %v1676_v47 }
 0x331   : > { %1988 = vmatmul.msk.bf16.vlgmr.msrb.gmra.mxu0 %vm1298_vm14, %v1984_v33  ;;  %1989 = vmatmul.msk.bf16.vlgmr.msrb.gmra.mxu1 %vm1298_vm14, %v1984_v33 }
 0x332   : > { %1991 = vmatmul.msk.bf16.vlgmr.msrb.gmra.mxu2 %vm1298_vm14, %v1990_v44  ;;  %1992 = vmatmul.msk.bf16.vlgmr.msrb.gmra.mxu3 %vm1298_vm14, %v1990_v44 }
 0x333   : > { %v1737_v63 = vpop.permute.xlu2 %1736 }
 0x337   : > { %v1627_v45 = vpop.permute.xlu1 %1626  ;;  %v1727_v16 = vpop.permute.xlu0 %1726 }
 0x338   : > { %v1632_v48 = vsel %vm697_vm7, %v1625_v46, %v1627_v45  ;;  %v1633_v0 = vsel %vm697_vm7, %v1627_v45, %v1629_v14 }
 0x339   : > { %v1640_v49 = vsel %vm422_vm1, %v1632_v48, 0  ;;  %v1643_v50 = vsel %vm422_vm1, %v1633_v0, 0  ;;  %v1814_v48 = vld [vmem:[%s2669_s8] sm:$0xff] }
 0x33a   : > { %1651 = vmatpush.bf16.msra.mxu0 %v1640_v49  ;;  %1664 = vmatpush.bf16.msra.mxu1 %v1643_v50 }
 0x33b   : > { %v1731_v15 = vpop.permute.xlu2 %1730  ;;  %1817 = vperm.xlu1 %2029, %v1814_v48  }
 0x33e   : > { %1652 = vmatpush.bf16.msra.mxu0 %v1630_v53  ;;  %1665 = vmatpush.bf16.msra.mxu1 %v1631_v54 }
 0x33f   : > { %v1680_v56 = vpop.permute.xlu1 %1679 }
 0x340   : > { %v1685_v57 = vsel %vm741_vm8, %v1678_v19, %v1680_v56  ;;  %v1686_v58 = vsel %vm741_vm8, %v1680_v56, %v1682_v52 }
 0x341   : > { %v1693_v59 = vsel %vm422_vm1, %v1685_v57, 0  ;;  %v1696_v60 = vsel %vm422_vm1, %v1686_v58, 0  ;;  %1995 = vmatmul.msk.bf16.vlgmr.msra.gmra.mxu0 %vm1298_vm14, %v1994_v55  ;;  %1996 = vmatmul.msk.bf16.vlgmr.msra.gmra.mxu1 %vm1298_vm14, %v1994_v55 }
 0x342   : > { %1704 = vmatpush.bf16.msra.mxu2 %v1693_v59  ;;  %1717 = vmatpush.bf16.msra.mxu3 %v1696_v60  ;;  %v1785_v60 = vpop.permute.xlu0 %1784 }
 0x346   : > { %1705 = vmatpush.bf16.msra.mxu2 %v1683_v4  ;;  %1718 = vmatpush.bf16.msra.mxu3 %v1684_v5 }
 0x347   : > { %v1735_v7 = vpop.permute.xlu1 %1734 }
 0x348   : > { %v1740_v9 = vsel %vm787_vm9, %v1733_v3, %v1735_v7  ;;  %v1741_v12 = vsel %vm787_vm9, %v1735_v7, %v1737_v63 }
 0x349   : > { %v1748_v14 = vsel %vm422_vm1, %v1740_v9, 0  ;;  %v1751_v13 = vsel %vm422_vm1, %v1741_v12, 0  ;;  %1997 = vmatmul.msk.bf16.vlgmr.msra.gmra.mxu2 %vm1298_vm14, %v1993_v6  ;;  %1998 = vmatmul.msk.bf16.vlgmr.msra.gmra.mxu3 %vm1298_vm14, %v1993_v6 }
 0x34a   : > { %1759 = vmatpush.bf16.msrb.mxu0 %v1748_v14  ;;  %1772 = vmatpush.bf16.msrb.mxu1 %v1751_v13 }
 0x34f   : > { %v1729_v17 = vpop.permute.xlu1 %1728 }
 0x350   : > { %v1738_v18 = vsel %vm787_vm9, %v1727_v16, %v1729_v17  ;;  %v1739_v19 = vsel %vm787_vm9, %v1729_v17, %v1731_v15 }
 0x351   : > { %1760 = vmatpush.bf16.msrb.mxu0 %v1738_v18  ;;  %1773 = vmatpush.bf16.msrb.mxu1 %v1739_v19 }
 0x354   : > { %2000 = vmatmul.msk.bf16.vlgmr.msrb.gmra.mxu0 %vm1298_vm14, %v1999_v20  ;;  %2001 = vmatmul.msk.bf16.vlgmr.msrb.gmra.mxu1 %vm1298_vm14, %v1999_v20 }
 0x386   : > { %v1317_v21 = vpop.f32.mrf.mxu0  ;;  %v1330_v22 = vpop.f32.mrf.mxu1 }
 0x38e   : > { %v1319_v24 = vpop.f32.mrf.mxu0  ;;  %v1332_v25 = vpop.f32.mrf.mxu1 }
 0x394   : > { %v1370_v26 = vpop.f32.mrf.mxu2  ;;  %v1383_v1 = vpop.f32.mrf.mxu3 }
 0x395   : > { %v1371_v52 = vadd.f32 %v1370_v26, %v1317_v21  ;;  %v1384_v53 = vadd.f32 %v1383_v1, %v1330_v22 }
 0x39c   : > { %v1372_v2 = vpop.f32.mrf.mxu2  ;;  %v1385_v30 = vpop.f32.mrf.mxu3 }
 0x39e   : > { %v1446_v29 = vpop.f32.mrf.mxu0  ;;  %v1459_v31 = vpop.f32.mrf.mxu1 }
 0x39f   : > { %v1463_v58 = vadd.f32 %v1446_v29, %v1371_v52  ;;  %v1464_v59 = vadd.f32 %v1459_v31, %v1384_v53  ;;  %v1851_v29 = vld [vmem:[%s2117_s15 + $0x8] sm:$0xff] }
 0x3a1   : > { %v1789_v9 = vmul.f32 %v2254_v61, %v1463_v58  ;;  %v1790_v12 = vmul.f32 %v2256_v62, %v1464_v59 }
 0x3a5   : > { %v1487_v32 = vpop.f32.mrf.mxu2  ;;  %v1500_v34 = vpop.f32.mrf.mxu3 }
 0x3a6   : > { %v1448_v35 = vpop.f32.mrf.mxu0  ;;  %v1461_v36 = vpop.f32.mrf.mxu1 }
 0x3ad   : > { %v1489_v37 = vpop.f32.mrf.mxu2  ;;  %v1502_v38 = vpop.f32.mrf.mxu3 }
 0x3ae   : > { %v1540_v39 = vpop.f32.mrf.mxu0  ;;  %v1553_v43 = vpop.f32.mrf.mxu1 }
 0x3af   : > { %v1541_v50 = vadd.f32 %v1540_v39, %v1487_v32  ;;  %v1554_v51 = vadd.f32 %v1553_v43, %v1500_v34 }
 0x3b5   : > { %v1595_v40 = vpop.f32.mrf.mxu2  ;;  %v1608_v41 = vpop.f32.mrf.mxu3 }
 0x3b6   : > { %v1542_v33 = vpop.f32.mrf.mxu0  ;;  %v1555_v42 = vpop.f32.mrf.mxu1  ;;  %v1612_v54 = vadd.f32 %v1595_v40, %v1541_v50  ;;  %v1613_v55 = vadd.f32 %v1608_v41, %v1554_v51 }
 0x3b8   : > { %v1787_v63 = vadd.f32 %v1785_v60, %v1612_v54  ;;  %v1788_v3 = vadd.f32 %v1785_v60, %v1613_v55 }
 0x3ba   : > { %v1791_v15 = vadd.f32 %v1789_v9, %v1787_v63  ;;  %v1792_v16 = vadd.f32 %v1790_v12, %v1788_v3 }
 0x3bd   : > { %v1597_v44 = vpop.f32.mrf.mxu2  ;;  %v1610_v46 = vpop.f32.mrf.mxu3 }
 0x3be   : > { %v1654_v47 = vpop.f32.mrf.mxu0  ;;  %v1667_v45 = vpop.f32.mrf.mxu1 }
 0x3c6   : > { %v1656_v0 = vpop.f32.mrf.mxu0  ;;  %v1669_v49 = vpop.f32.mrf.mxu1 }
 0x3cc   : > { %v1707_v56 = vpop.f32.mrf.mxu2  ;;  %v1720_v57 = vpop.f32.mrf.mxu3 }
 0x3cd   : > { %v1708_v4 = vadd.f32 %v1707_v56, %v1654_v47  ;;  %v1721_v5 = vadd.f32 %v1720_v57, %v1667_v45 }
 0x3d1   : > { %v1762_v6 = vpop.f32.mrf.mxu0  ;;  %v1775_v7 = vpop.f32.mrf.mxu1 }
 0x3d2   : > { %v1779_v14 = vadd.f32 %v1762_v6, %v1708_v4  ;;  %v1780_v13 = vadd.f32 %v1775_v7, %v1721_v5 }
 0x3d4   : > { %v1793_v17 = vmul.f32 %v2258_v8, %v1779_v14  ;;  %v1794_v18 = vmul.f32 %v2260_v10, %v1780_v13  ;;  %v1709_v19 = vpop.f32.mrf.mxu2  ;;  %v1722_v20 = vpop.f32.mrf.mxu3  ;;  %v1813_v8 = vld [vmem:[%s2668_s7] sm:$0xf] }
 0x3d5   : > { %v1818_v10 = vpop.permute.xlu1 %1817 }
 0x3d6   : > { %v1795_v21 = vadd.f32 %v1793_v17, %v1791_v15  ;;  %v1796_v22 = vadd.f32 %v1794_v18, %v1792_v16 }
 0x3d8   : > { %v1797_v24 = vmax.f32 %v1795_v21, 0.0  ;;  %v1798_v25 = vmax.f32 %v1796_v22, 0.0 }
 0x3d9   : > { %v1764_v26 = vpop.f32.mrf.mxu0  ;;  %v1777_v61 = vpop.f32.mrf.mxu1 }
 0x3da   : > { %v1811_v62 = vpack.c.bf16 %v1797_v24, %v2424_v11  ;;  %v1812_v1 = vpack.c.bf16 %v1798_v25, %v2436_v23  ;;  %v1850_v11 = vld [vmem:[%s2117_s15] sm:$0xff] }
 0x3dc   : > { %1830 = vmatpush.bf16.msrb.mxu2 %v1811_v62  ;;  %1843 = vmatpush.bf16.msrb.mxu3 %v1812_v1 }
 0x3e0   : > { %1831 = vmatpush.bf16.msrb.mxu2 %v2267_v27  ;;  %1844 = vmatpush.bf16.msrb.mxu3 %v2270_v28 }
 0x3e3   : > { %2002 = vmatmul.msk.bf16.vlgmr.msrb.gmra.mxu2 %vm1820_vm15, %v1813_v8  ;;  %2003 = vmatmul.msk.bf16.vlgmr.msrb.gmra.mxu3 %vm1820_vm15, %v1813_v8 }
 0x466   : > { %v1833_v2 = vpop.f32.mrf.mxu2  ;;  %v1846_v30 = vpop.f32.mrf.mxu3 }
 0x467   : > { %v1834_v23 = vadd.f32 %v1833_v2, %v1818_v10  ;;  %v1847_v31 = vadd.f32 %v1846_v30, %v1818_v10 }
 0x469   : > { %v1852_v27 = vadd.f32 %v1850_v11, %v1834_v23  ;;  %v1853_v28 = vadd.f32 %v1851_v29, %v1847_v31 }
 0x46b   : > { %1854 = vst [vmem:[%s332_s28] sm:$0xff] %v1852_v27 }
 0x46c   : > { %1855 = vst [vmem:[%s332_s28 + $0x8] sm:$0xff] %v1853_v28 }
 0x46e   : > { %v1835_v32 = vpop.f32.mrf.mxu2  ;;  %v1848_v34 = vpop.f32.mrf.mxu3 }
 0x46f PF: > { %s19_s30 = sadd.s32 1, %s2036_s30  }
 0x470   : > { %p16_p4 = scmp.ge.s32.totalorder %s19_s30, 4  }
 0x472   :  { %18 = sbr.rel (!%p16_p4) target bundleno = 1 (0x1), region = 110 }

</bundles_post_ra>
